<compile_context>
chip_gen: v6e
topology: v6e:2x2x1
jax: 0.10.0
libtpu: 0.0.40
codegen_flags: <defaults>
</compile_context>

<pallas_src>
import jax
import jax.numpy as jnp
from jax.experimental import pallas as pl
from jax.experimental.pallas import tpu as pltpu


# ----------------------------------------------------------------------------
# Problem dimensions (small shapes consistent with the module structure)
# ----------------------------------------------------------------------------
N = 2                      # batch
CIN = 3                    # conv1 in channels
C1 = 8                     # conv1 out channels
C2 = 16                    # conv2 out channels
H = W = 16                 # input spatial size
H1, W1 = H // 2, W // 2    # after pool1 (conv2 spatial size)
H2, W2 = H // 4, W // 4    # after pool2
HW = H * W                 # 256 lanes in stage 1
HW1 = H1 * W1              # 64 lanes in stage 2
NUM_CLASSES = 2
FC_IN = C2 * H2 * W2       # 256 (torch flattens in (c, h, w) order)
O_PAD = 128                # lane-dense padded logits width


# ----------------------------------------------------------------------------
# In-kernel helpers (pure value ops on lane-dense (C, H*W) activations)
# ----------------------------------------------------------------------------
def _conv3x3_taps(xin, w_ref, mask_ref, row_w, hw):
    """3x3 'same' conv on a (Cin, hw) activation, spatial flattened on lanes.

    Each of the 9 taps is an XLU lane rotate + VPU halo-mask multiply followed
    by a (Cout, Cin) x (Cin, hw) MXU matmul accumulated in f32.  No padded
    scratch, no concatenation, no reshape.
    """
    acc = None
    for t in range(9):
        dh, dw = t // 3 - 1, t % 3 - 1
        off = dh * row_w + dw                      # lane offset of this tap
        if off == 0:
            tap = xin                              # centre tap: no shift, mask==1
        else:
            rolled = pltpu.roll(xin, shift=(-off) % hw, axis=1)
            tap = rolled * mask_ref[t:t + 1, :]    # zero out-of-image halo taps
        contrib = jnp.dot(w_ref[t], tap, preferred_element_type=jnp.float32)
        acc = contrib if acc is None else acc + contrib
    return acc                                     # (Cout, hw)


def _pool2x2_max(y, row_w, hw):
    """Max over each 2x2 block, left at the block's top-left lane position.

    Two roll-and-max steps (XLU rotate + VPU max).  The stride-2 selection of
    the top-left positions is done by a 0/1 matmul (pool1) or by the folded FC
    weights (pool2), so no strided slicing / rank-5 reshape is needed.
    """
    m = jnp.maximum(y, pltpu.roll(y, shift=hw - 1, axis=1))       # pair along w
    m = jnp.maximum(m, pltpu.roll(m, shift=hw - row_w, axis=1))   # pair along h
    return m


# ----------------------------------------------------------------------------
# Fused forward kernel: conv1+relu+pool1+conv2+relu+pool2+flatten+fc
# (one image per grid step; every intermediate lives in VMEM / vregs)
# ----------------------------------------------------------------------------
def fused_cnn_kernel(x_ref, w1_ref, b1_ref, w2_ref, b2_ref, wfc_ref, bfc_ref,
                     m1_ref, m2_ref, s1_ref, o_ref):
    x = x_ref[0]                                             # (CIN, 256) lane-dense

    # --- conv1 (3x3, same) + bias + ReLU ------------------------------------
    y1 = _conv3x3_taps(x, w1_ref, m1_ref, W, HW)             # (C1, 256)
    y1 = jnp.maximum(y1 + b1_ref[...], 0.0)

    # --- maxpool 2x2: roll-max + stride-2 selection as 0/1 matmul ------------
    p1 = jnp.dot(_pool2x2_max(y1, W, HW), s1_ref[...],
                 preferred_element_type=jnp.float32)         # (C1, 64)

    # --- conv2 (3x3, same) + bias + ReLU ------------------------------------
    y2 = _conv3x3_taps(p1, w2_ref, m2_ref, W1, HW1)          # (C2, 64)
    y2 = jnp.maximum(y2 + b2_ref[...], 0.0)

    # --- maxpool 2x2 + flatten + fc1 -----------------------------------------
    # Pool2's stride-2 selection AND torch's (c,h,w) flatten order are folded
    # into wfc_ref (C2, 64, 128) on the host, so the FC is just C2 lane-dense
    # vector-matrix products on the (otherwise idle) MXU — no flatten reshape.
    m2b = _pool2x2_max(y2, W1, HW1)                          # (C2, 64)
    acc = bfc_ref[...]                                       # (1, 128)
    for c in range(C2):
        acc = acc + jnp.dot(m2b[c:c + 1, :], wfc_ref[c],
                            preferred_element_type=jnp.float32)
    o_ref[0] = acc                                           # lane-dense (1, 128)


# ----------------------------------------------------------------------------
# Host-side (one-time) constant / parameter repacking
# ----------------------------------------------------------------------------
def _conv_halo_masks(h, w):
    """(9, h*w) f32: mask[t, p] = 1 iff tap (dh, dw) = (t//3-1, t%3-1) at flat
    position p stays inside the image (implements the conv's zero padding)."""
    hh = jnp.arange(h)[:, None]
    ww = jnp.arange(w)[None, :]
    rows = []
    for t in range(9):
        dh, dw = t // 3 - 1, t % 3 - 1
        ok = (hh + dh >= 0) & (hh + dh < h) & (ww + dw >= 0) & (ww + dw < w)
        rows.append(ok.astype(jnp.float32).reshape(h * w))
    return jnp.stack(rows)


def _pool_select_matrix(h, w):
    """(h*w, (h//2)*(w//2)) 0/1 matrix gathering the top-left lane of every
    2x2 block (stride-2 selection expressed as a matmul on the idle MXU)."""
    ho, wo = h // 2, w // 2
    q = jnp.arange(ho * wo)
    p = 2 * (q // wo) * w + 2 * (q % wo)
    return jnp.zeros((h * w, ho * wo), jnp.float32).at[p, q].set(1.0)


def prepare_params(torch_params):
    """One-time host-side repack from torch layouts to kernel layouts."""
    w1 = torch_params["w1"]          # (C1, CIN, 3, 3)  OIHW
    w2 = torch_params["w2"]          # (C2, C1, 3, 3)   OIHW
    wfc = torch_params["wfc"]        # (NUM_CLASSES, FC_IN), torch (c,h,w) order

    # Per-tap conv weights: (9, Cout, Cin), tap index t = kh*3 + kw.
    w1_k = jnp.transpose(w1, (2, 3, 0, 1)).reshape(9, C1, CIN)
    w2_k = jnp.transpose(w2, (2, 3, 0, 1)).reshape(9, C2, C1)

    # Fold pool2's stride-2 selection + torch (c,h,w) flatten order into fc1:
    # wfc_k[c, hp*W1 + wp, o] = wfc[o, c*H2*W2 + (hp//2)*W2 + (wp//2)] at even
    # (hp, wp), zero elsewhere.  Output lanes padded to 128 (lane-dense store).
    wfc3 = jnp.transpose(wfc.reshape(NUM_CLASSES, C2, H2, W2), (1, 2, 3, 0))
    wfc_k = jnp.zeros((C2, H1, W1, NUM_CLASSES), jnp.float32)
    wfc_k = wfc_k.at[:, ::2, ::2, :].set(wfc3)
    wfc_k = wfc_k.reshape(C2, HW1, NUM_CLASSES)
    wfc_k = jnp.pad(wfc_k, ((0, 0), (0, 0), (0, O_PAD - NUM_CLASSES)))
    bfc_k = jnp.pad(torch_params["bfc"], (0, O_PAD - NUM_CLASSES)).reshape(1, O_PAD)

    return {
        "w1": w1_k, "b1": torch_params["b1"].reshape(C1, 1),
        "w2": w2_k, "b2": torch_params["b2"].reshape(C2, 1),
        "wfc": wfc_k, "bfc": bfc_k,
        "m1": _conv_halo_masks(H, W),       # (9, 256) conv1 halo masks
        "m2": _conv_halo_masks(H1, W1),     # (9, 64)  conv2 halo masks
        "s1": _pool_select_matrix(H, W),    # (256, 64) pool1 selection
    }


# ----------------------------------------------------------------------------
# Forward pass (single fused pallas_call, batch on a "parallel" grid axis)
# ----------------------------------------------------------------------------
@jax.jit
def model_forward(x_nchw, kp):
    # NCHW consumed directly: flattening (H, W) -> H*W is a free, layout-
    # preserving reshape (no transpose / copy op in the wrapper).
    xf = x_nchw.reshape(N, CIN, HW)

    out = pl.pallas_call(
        fused_cnn_kernel,
        out_shape=jax.ShapeDtypeStruct((N, 1, O_PAD), jnp.float32),
        grid=(N,),
        in_specs=[
            pl.BlockSpec((1, CIN, HW), lambda n: (n, 0, 0)),      # x (one image)
            pl.BlockSpec((9, C1, CIN), lambda n: (0, 0, 0)),      # conv1 taps
            pl.BlockSpec((C1, 1), lambda n: (0, 0)),              # conv1 bias
            pl.BlockSpec((9, C2, C1), lambda n: (0, 0, 0)),       # conv2 taps
            pl.BlockSpec((C2, 1), lambda n: (0, 0)),              # conv2 bias
            pl.BlockSpec((C2, HW1, O_PAD), lambda n: (0, 0, 0)),  # folded fc weight
            pl.BlockSpec((1, O_PAD), lambda n: (0, 0)),           # fc bias (padded)
            pl.BlockSpec((9, HW), lambda n: (0, 0)),              # conv1 halo masks
            pl.BlockSpec((9, HW1), lambda n: (0, 0)),             # conv2 halo masks
            pl.BlockSpec((HW, HW1), lambda n: (0, 0)),            # pool1 selection
        ],
        out_specs=pl.BlockSpec((1, 1, O_PAD), lambda n: (n, 0, 0)),
        compiler_params=pltpu.CompilerParams(
            dimension_semantics=("parallel",)),
    )(xf, kp["w1"], kp["b1"], kp["w2"], kp["b2"],
      kp["wfc"], kp["bfc"], kp["m1"], kp["m2"], kp["s1"])

    return out[:, 0, :NUM_CLASSES]


# ----------------------------------------------------------------------------
# Pure-JAX reference with exact torch semantics (NCHW conv, NCHW flatten order)
# ----------------------------------------------------------------------------
def reference_forward(x_nchw, torch_params):
    dn = ("NCHW", "OIHW", "NCHW")

    def conv(x, w, b):
        y = jax.lax.conv_general_dilated(
            x, w, window_strides=(1, 1), padding=((1, 1), (1, 1)),
            dimension_numbers=dn)
        return jnp.maximum(y + b[None, :, None, None], 0.0)

    def pool(x):
        return jax.lax.reduce_window(
            x, -jnp.inf, jax.lax.max,
            window_dimensions=(1, 1, 2, 2), window_strides=(1, 1, 2, 2),
            padding="VALID")

    x = pool(conv(x_nchw, torch_params["w1"], torch_params["b1"]))
    x = pool(conv(x, torch_params["w2"], torch_params["b2"]))
    x = x.reshape(x.shape[0], -1)                    # torch (c, h, w) flatten
    return x @ torch_params["wfc"].T + torch_params["bfc"][None, :]


# ----------------------------------------------------------------------------
if __name__ == "__main__":
    key = jax.random.PRNGKey(0)
    k_x, k_w1, k_b1, k_w2, k_b2, k_wfc, k_bfc = jax.random.split(key, 7)

    # Parameters stored in torch-native layouts.
    torch_params = {
        "w1": jax.random.normal(k_w1, (C1, CIN, 3, 3), jnp.float32) * 0.1,
        "b1": jax.random.normal(k_b1, (C1,), jnp.float32) * 0.1,
        "w2": jax.random.normal(k_w2, (C2, C1, 3, 3), jnp.float32) * 0.1,
        "b2": jax.random.normal(k_b2, (C2,), jnp.float32) * 0.1,
        "wfc": jax.random.normal(k_wfc, (NUM_CLASSES, FC_IN), jnp.float32) * 0.05,
        "bfc": jax.random.normal(k_bfc, (NUM_CLASSES,), jnp.float32) * 0.05,
    }
    x = jax.random.normal(k_x, (N, CIN, H, W), jnp.float32)

    # One-time host-side repack of weights/constants into kernel layouts.
    kparams = prepare_params(torch_params)

    out = jax.block_until_ready(model_forward(x, kparams))
    ref = jax.block_until_ready(reference_forward(x, torch_params))

    assert out.shape == (N, NUM_CLASSES)
    assert jnp.allclose(out, ref, atol=1e-4, rtol=1e-4), (out, ref)

    print("KERNEL_OK")
</pallas_src>

<mosaic_0001>
module attributes {stable_mosaic.version = 11 : i64} {
  func.func @fused_cnn_kernel(%arg0: i32, %arg1: memref<1x3x256xf32, #tpu.memory_space<vmem>>, %arg2: memref<9x8x3xf32, #tpu.memory_space<vmem>>, %arg3: memref<8x1xf32, #tpu.memory_space<vmem>>, %arg4: memref<9x16x8xf32, #tpu.memory_space<vmem>>, %arg5: memref<16x1xf32, #tpu.memory_space<vmem>>, %arg6: memref<16x64x128xf32, #tpu.memory_space<vmem>>, %arg7: memref<1x128xf32, #tpu.memory_space<vmem>>, %arg8: memref<9x256xf32, #tpu.memory_space<vmem>>, %arg9: memref<9x64xf32, #tpu.memory_space<vmem>>, %arg10: memref<256x64xf32, #tpu.memory_space<vmem>>, %arg11: memref<1x1x128xf32, #tpu.memory_space<vmem>>) attributes {dimension_semantics = [#tpu.dimension_semantics<parallel>], iteration_bounds = array<i64: 2>, scalar_prefetch = 0 : i64, scratch_operands = 0 : i64, tpu.core_type = #tpu.core_type<tc>, window_params = [{transform_indices = @transform_0, window_bounds = array<i64: 1, 3, 256>}, {pipeline_mode = #tpu.pipeline_mode<synchronous>, transform_indices = @transform_1, window_bounds = array<i64: 9, 8, 3>}, {pipeline_mode = #tpu.pipeline_mode<synchronous>, transform_indices = @transform_2, window_bounds = array<i64: 8, 1>}, {pipeline_mode = #tpu.pipeline_mode<synchronous>, transform_indices = @transform_3, window_bounds = array<i64: 9, 16, 8>}, {pipeline_mode = #tpu.pipeline_mode<synchronous>, transform_indices = @transform_4, window_bounds = array<i64: 16, 1>}, {pipeline_mode = #tpu.pipeline_mode<synchronous>, transform_indices = @transform_5, window_bounds = array<i64: 16, 64, 128>}, {pipeline_mode = #tpu.pipeline_mode<synchronous>, transform_indices = @transform_6, window_bounds = array<i64: 1, 128>}, {pipeline_mode = #tpu.pipeline_mode<synchronous>, transform_indices = @transform_7, window_bounds = array<i64: 9, 256>}, {pipeline_mode = #tpu.pipeline_mode<synchronous>, transform_indices = @transform_8, window_bounds = array<i64: 9, 64>}, {pipeline_mode = #tpu.pipeline_mode<synchronous>, transform_indices = @transform_9, window_bounds = array<i64: 256, 64>}, {transform_indices = @transform_10, window_bounds = array<i64: 1, 1, 128>}]} {
    %c0 = arith.constant 0 : index
    %c0_0 = arith.constant 0 : index
    %c0_1 = arith.constant 0 : index
    %0 = vector.load %arg1[%c0, %c0_0, %c0_1] : memref<1x3x256xf32, #tpu.memory_space<vmem>>, vector<1x3x256xf32>
    %1 = vector.shape_cast %0 : vector<1x3x256xf32> to vector<3x256xf32>
    %c17_i32 = arith.constant 17 : i32
    %2 = tpu.dynamic_rotate %1 by %c17_i32 dim 1 : vector<3x256xf32>, i32 -> vector<3x256xf32>
    %c0_2 = arith.constant 0 : index
    %c0_3 = arith.constant 0 : index
    %3 = vector.load %arg8[%c0_2, %c0_3] : memref<9x256xf32, #tpu.memory_space<vmem>>, vector<1x256xf32>
    %4 = vector.broadcast %3 : vector<1x256xf32> to vector<3x256xf32>
    %5 = arith.mulf %2, %4 : vector<3x256xf32>
    %c0_4 = arith.constant 0 : index
    %c0_5 = arith.constant 0 : index
    %c0_6 = arith.constant 0 : index
    %6 = vector.load %arg2[%c0_4, %c0_5, %c0_6] : memref<9x8x3xf32, #tpu.memory_space<vmem>>, vector<1x8x3xf32>
    %7 = vector.shape_cast %6 : vector<1x8x3xf32> to vector<8x3xf32>
    %cst = arith.constant dense<0.000000e+00> : vector<8x256xf32>
    %8 = tpu.matmul %7, %5, %cst {dimension_numbers = #tpu.dot_dimension_numbers<[1], [0], [0], [1], [0, 0, 1, 1], [], []>} : vector<8x3xf32>, vector<3x256xf32>, vector<8x256xf32> -> vector<8x256xf32>
    %c16_i32 = arith.constant 16 : i32
    %9 = tpu.dynamic_rotate %1 by %c16_i32 dim 1 : vector<3x256xf32>, i32 -> vector<3x256xf32>
    %c1 = arith.constant 1 : index
    %c0_7 = arith.constant 0 : index
    %10 = vector.load %arg8[%c1, %c0_7] : memref<9x256xf32, #tpu.memory_space<vmem>>, vector<1x256xf32>
    %11 = vector.broadcast %10 : vector<1x256xf32> to vector<3x256xf32>
    %12 = arith.mulf %9, %11 : vector<3x256xf32>
    %c1_8 = arith.constant 1 : index
    %c0_9 = arith.constant 0 : index
    %c0_10 = arith.constant 0 : index
    %13 = vector.load %arg2[%c1_8, %c0_9, %c0_10] : memref<9x8x3xf32, #tpu.memory_space<vmem>>, vector<1x8x3xf32>
    %14 = vector.shape_cast %13 : vector<1x8x3xf32> to vector<8x3xf32>
    %cst_11 = arith.constant dense<0.000000e+00> : vector<8x256xf32>
    %15 = tpu.matmul %14, %12, %cst_11 {dimension_numbers = #tpu.dot_dimension_numbers<[1], [0], [0], [1], [0, 0, 1, 1], [], []>} : vector<8x3xf32>, vector<3x256xf32>, vector<8x256xf32> -> vector<8x256xf32>
    %16 = arith.addf %8, %15 : vector<8x256xf32>
    %c15_i32 = arith.constant 15 : i32
    %17 = tpu.dynamic_rotate %1 by %c15_i32 dim 1 : vector<3x256xf32>, i32 -> vector<3x256xf32>
    %c2 = arith.constant 2 : index
    %c0_12 = arith.constant 0 : index
    %18 = vector.load %arg8[%c2, %c0_12] : memref<9x256xf32, #tpu.memory_space<vmem>>, vector<1x256xf32>
    %19 = vector.broadcast %18 : vector<1x256xf32> to vector<3x256xf32>
    %20 = arith.mulf %17, %19 : vector<3x256xf32>
    %c2_13 = arith.constant 2 : index
    %c0_14 = arith.constant 0 : index
    %c0_15 = arith.constant 0 : index
    %21 = vector.load %arg2[%c2_13, %c0_14, %c0_15] : memref<9x8x3xf32, #tpu.memory_space<vmem>>, vector<1x8x3xf32>
    %22 = vector.shape_cast %21 : vector<1x8x3xf32> to vector<8x3xf32>
    %cst_16 = arith.constant dense<0.000000e+00> : vector<8x256xf32>
    %23 = tpu.matmul %22, %20, %cst_16 {dimension_numbers = #tpu.dot_dimension_numbers<[1], [0], [0], [1], [0, 0, 1, 1], [], []>} : vector<8x3xf32>, vector<3x256xf32>, vector<8x256xf32> -> vector<8x256xf32>
    %24 = arith.addf %16, %23 : vector<8x256xf32>
    %c1_i32 = arith.constant 1 : i32
    %25 = tpu.dynamic_rotate %1 by %c1_i32 dim 1 : vector<3x256xf32>, i32 -> vector<3x256xf32>
    %c3 = arith.constant 3 : index
    %c0_17 = arith.constant 0 : index
    %26 = vector.load %arg8[%c3, %c0_17] : memref<9x256xf32, #tpu.memory_space<vmem>>, vector<1x256xf32>
    %27 = vector.broadcast %26 : vector<1x256xf32> to vector<3x256xf32>
    %28 = arith.mulf %25, %27 : vector<3x256xf32>
    %c3_18 = arith.constant 3 : index
    %c0_19 = arith.constant 0 : index
    %c0_20 = arith.constant 0 : index
    %29 = vector.load %arg2[%c3_18, %c0_19, %c0_20] : memref<9x8x3xf32, #tpu.memory_space<vmem>>, vector<1x8x3xf32>
    %30 = vector.shape_cast %29 : vector<1x8x3xf32> to vector<8x3xf32>
    %cst_21 = arith.constant dense<0.000000e+00> : vector<8x256xf32>
    %31 = tpu.matmul %30, %28, %cst_21 {dimension_numbers = #tpu.dot_dimension_numbers<[1], [0], [0], [1], [0, 0, 1, 1], [], []>} : vector<8x3xf32>, vector<3x256xf32>, vector<8x256xf32> -> vector<8x256xf32>
    %32 = arith.addf %24, %31 : vector<8x256xf32>
    %c4 = arith.constant 4 : index
    %c0_22 = arith.constant 0 : index
    %c0_23 = arith.constant 0 : index
    %33 = vector.load %arg2[%c4, %c0_22, %c0_23] : memref<9x8x3xf32, #tpu.memory_space<vmem>>, vector<1x8x3xf32>
    %34 = vector.shape_cast %33 : vector<1x8x3xf32> to vector<8x3xf32>
    %cst_24 = arith.constant dense<0.000000e+00> : vector<8x256xf32>
    %35 = tpu.matmul %34, %1, %cst_24 {dimension_numbers = #tpu.dot_dimension_numbers<[1], [0], [0], [1], [0, 0, 1, 1], [], []>} : vector<8x3xf32>, vector<3x256xf32>, vector<8x256xf32> -> vector<8x256xf32>
    %36 = arith.addf %32, %35 : vector<8x256xf32>
    %c255_i32 = arith.constant 255 : i32
    %37 = tpu.dynamic_rotate %1 by %c255_i32 dim 1 : vector<3x256xf32>, i32 -> vector<3x256xf32>
    %c5 = arith.constant 5 : index
    %c0_25 = arith.constant 0 : index
    %38 = vector.load %arg8[%c5, %c0_25] : memref<9x256xf32, #tpu.memory_space<vmem>>, vector<1x256xf32>
    %39 = vector.broadcast %38 : vector<1x256xf32> to vector<3x256xf32>
    %40 = arith.mulf %37, %39 : vector<3x256xf32>
    %c5_26 = arith.constant 5 : index
    %c0_27 = arith.constant 0 : index
    %c0_28 = arith.constant 0 : index
    %41 = vector.load %arg2[%c5_26, %c0_27, %c0_28] : memref<9x8x3xf32, #tpu.memory_space<vmem>>, vector<1x8x3xf32>
    %42 = vector.shape_cast %41 : vector<1x8x3xf32> to vector<8x3xf32>
    %cst_29 = arith.constant dense<0.000000e+00> : vector<8x256xf32>
    %43 = tpu.matmul %42, %40, %cst_29 {dimension_numbers = #tpu.dot_dimension_numbers<[1], [0], [0], [1], [0, 0, 1, 1], [], []>} : vector<8x3xf32>, vector<3x256xf32>, vector<8x256xf32> -> vector<8x256xf32>
    %44 = arith.addf %36, %43 : vector<8x256xf32>
    %c241_i32 = arith.constant 241 : i32
    %45 = tpu.dynamic_rotate %1 by %c241_i32 dim 1 : vector<3x256xf32>, i32 -> vector<3x256xf32>
    %c6 = arith.constant 6 : index
    %c0_30 = arith.constant 0 : index
    %46 = vector.load %arg8[%c6, %c0_30] : memref<9x256xf32, #tpu.memory_space<vmem>>, vector<1x256xf32>
    %47 = vector.broadcast %46 : vector<1x256xf32> to vector<3x256xf32>
    %48 = arith.mulf %45, %47 : vector<3x256xf32>
    %c6_31 = arith.constant 6 : index
    %c0_32 = arith.constant 0 : index
    %c0_33 = arith.constant 0 : index
    %49 = vector.load %arg2[%c6_31, %c0_32, %c0_33] : memref<9x8x3xf32, #tpu.memory_space<vmem>>, vector<1x8x3xf32>
    %50 = vector.shape_cast %49 : vector<1x8x3xf32> to vector<8x3xf32>
    %cst_34 = arith.constant dense<0.000000e+00> : vector<8x256xf32>
    %51 = tpu.matmul %50, %48, %cst_34 {dimension_numbers = #tpu.dot_dimension_numbers<[1], [0], [0], [1], [0, 0, 1, 1], [], []>} : vector<8x3xf32>, vector<3x256xf32>, vector<8x256xf32> -> vector<8x256xf32>
    %52 = arith.addf %44, %51 : vector<8x256xf32>
    %c240_i32 = arith.constant 240 : i32
    %53 = tpu.dynamic_rotate %1 by %c240_i32 dim 1 : vector<3x256xf32>, i32 -> vector<3x256xf32>
    %c7 = arith.constant 7 : index
    %c0_35 = arith.constant 0 : index
    %54 = vector.load %arg8[%c7, %c0_35] : memref<9x256xf32, #tpu.memory_space<vmem>>, vector<1x256xf32>
    %55 = vector.broadcast %54 : vector<1x256xf32> to vector<3x256xf32>
    %56 = arith.mulf %53, %55 : vector<3x256xf32>
    %c7_36 = arith.constant 7 : index
    %c0_37 = arith.constant 0 : index
    %c0_38 = arith.constant 0 : index
    %57 = vector.load %arg2[%c7_36, %c0_37, %c0_38] : memref<9x8x3xf32, #tpu.memory_space<vmem>>, vector<1x8x3xf32>
    %58 = vector.shape_cast %57 : vector<1x8x3xf32> to vector<8x3xf32>
    %cst_39 = arith.constant dense<0.000000e+00> : vector<8x256xf32>
    %59 = tpu.matmul %58, %56, %cst_39 {dimension_numbers = #tpu.dot_dimension_numbers<[1], [0], [0], [1], [0, 0, 1, 1], [], []>} : vector<8x3xf32>, vector<3x256xf32>, vector<8x256xf32> -> vector<8x256xf32>
    %60 = arith.addf %52, %59 : vector<8x256xf32>
    %c239_i32 = arith.constant 239 : i32
    %61 = tpu.dynamic_rotate %1 by %c239_i32 dim 1 : vector<3x256xf32>, i32 -> vector<3x256xf32>
    %c8 = arith.constant 8 : index
    %c0_40 = arith.constant 0 : index
    %62 = vector.load %arg8[%c8, %c0_40] : memref<9x256xf32, #tpu.memory_space<vmem>>, vector<1x256xf32>
    %63 = vector.broadcast %62 : vector<1x256xf32> to vector<3x256xf32>
    %64 = arith.mulf %61, %63 : vector<3x256xf32>
    %c8_41 = arith.constant 8 : index
    %c0_42 = arith.constant 0 : index
    %c0_43 = arith.constant 0 : index
    %65 = vector.load %arg2[%c8_41, %c0_42, %c0_43] : memref<9x8x3xf32, #tpu.memory_space<vmem>>, vector<1x8x3xf32>
    %66 = vector.shape_cast %65 : vector<1x8x3xf32> to vector<8x3xf32>
    %cst_44 = arith.constant dense<0.000000e+00> : vector<8x256xf32>
    %67 = tpu.matmul %66, %64, %cst_44 {dimension_numbers = #tpu.dot_dimension_numbers<[1], [0], [0], [1], [0, 0, 1, 1], [], []>} : vector<8x3xf32>, vector<3x256xf32>, vector<8x256xf32> -> vector<8x256xf32>
    %68 = arith.addf %60, %67 : vector<8x256xf32>
    %c0_45 = arith.constant 0 : index
    %c0_46 = arith.constant 0 : index
    %69 = vector.load %arg3[%c0_45, %c0_46] : memref<8x1xf32, #tpu.memory_space<vmem>>, vector<8x1xf32>
    %70 = vector.broadcast %69 : vector<8x1xf32> to vector<8x256xf32>
    %71 = arith.addf %68, %70 : vector<8x256xf32>
    %cst_47 = arith.constant 0.000000e+00 : f32
    %72 = vector.broadcast %cst_47 : f32 to vector<8x256xf32>
    %73 = arith.maximumf %71, %72 : vector<8x256xf32>
    %c255_i32_48 = arith.constant 255 : i32
    %74 = tpu.dynamic_rotate %73 by %c255_i32_48 dim 1 : vector<8x256xf32>, i32 -> vector<8x256xf32>
    %75 = arith.maximumf %73, %74 : vector<8x256xf32>
    %c240_i32_49 = arith.constant 240 : i32
    %76 = tpu.dynamic_rotate %75 by %c240_i32_49 dim 1 : vector<8x256xf32>, i32 -> vector<8x256xf32>
    %77 = arith.maximumf %75, %76 : vector<8x256xf32>
    %c0_50 = arith.constant 0 : index
    %c0_51 = arith.constant 0 : index
    %78 = vector.load %arg10[%c0_50, %c0_51] : memref<256x64xf32, #tpu.memory_space<vmem>>, vector<256x64xf32>
    %cst_52 = arith.constant dense<0.000000e+00> : vector<8x64xf32>
    %79 = tpu.matmul %77, %78, %cst_52 {dimension_numbers = #tpu.dot_dimension_numbers<[1], [0], [0], [1], [0, 0, 1, 1], [], []>} : vector<8x256xf32>, vector<256x64xf32>, vector<8x64xf32> -> vector<8x64xf32>
    %c9_i32 = arith.constant 9 : i32
    %80 = tpu.dynamic_rotate %79 by %c9_i32 dim 1 : vector<8x64xf32>, i32 -> vector<8x64xf32>
    %c0_53 = arith.constant 0 : index
    %c0_54 = arith.constant 0 : index
    %81 = vector.load %arg9[%c0_53, %c0_54] : memref<9x64xf32, #tpu.memory_space<vmem>>, vector<1x64xf32>
    %82 = vector.broadcast %81 : vector<1x64xf32> to vector<8x64xf32>
    %83 = arith.mulf %80, %82 : vector<8x64xf32>
    %c0_55 = arith.constant 0 : index
    %c0_56 = arith.constant 0 : index
    %c0_57 = arith.constant 0 : index
    %84 = vector.load %arg4[%c0_55, %c0_56, %c0_57] : memref<9x16x8xf32, #tpu.memory_space<vmem>>, vector<1x16x8xf32>
    %85 = vector.shape_cast %84 : vector<1x16x8xf32> to vector<16x8xf32>
    %cst_58 = arith.constant dense<0.000000e+00> : vector<16x64xf32>
    %86 = tpu.matmul %85, %83, %cst_58 {dimension_numbers = #tpu.dot_dimension_numbers<[1], [0], [0], [1], [0, 0, 1, 1], [], []>} : vector<16x8xf32>, vector<8x64xf32>, vector<16x64xf32> -> vector<16x64xf32>
    %c8_i32 = arith.constant 8 : i32
    %87 = tpu.dynamic_rotate %79 by %c8_i32 dim 1 : vector<8x64xf32>, i32 -> vector<8x64xf32>
    %c1_59 = arith.constant 1 : index
    %c0_60 = arith.constant 0 : index
    %88 = vector.load %arg9[%c1_59, %c0_60] : memref<9x64xf32, #tpu.memory_space<vmem>>, vector<1x64xf32>
    %89 = vector.broadcast %88 : vector<1x64xf32> to vector<8x64xf32>
    %90 = arith.mulf %87, %89 : vector<8x64xf32>
    %c1_61 = arith.constant 1 : index
    %c0_62 = arith.constant 0 : index
    %c0_63 = arith.constant 0 : index
    %91 = vector.load %arg4[%c1_61, %c0_62, %c0_63] : memref<9x16x8xf32, #tpu.memory_space<vmem>>, vector<1x16x8xf32>
    %92 = vector.shape_cast %91 : vector<1x16x8xf32> to vector<16x8xf32>
    %cst_64 = arith.constant dense<0.000000e+00> : vector<16x64xf32>
    %93 = tpu.matmul %92, %90, %cst_64 {dimension_numbers = #tpu.dot_dimension_numbers<[1], [0], [0], [1], [0, 0, 1, 1], [], []>} : vector<16x8xf32>, vector<8x64xf32>, vector<16x64xf32> -> vector<16x64xf32>
    %94 = arith.addf %86, %93 : vector<16x64xf32>
    %c7_i32 = arith.constant 7 : i32
    %95 = tpu.dynamic_rotate %79 by %c7_i32 dim 1 : vector<8x64xf32>, i32 -> vector<8x64xf32>
    %c2_65 = arith.constant 2 : index
    %c0_66 = arith.constant 0 : index
    %96 = vector.load %arg9[%c2_65, %c0_66] : memref<9x64xf32, #tpu.memory_space<vmem>>, vector<1x64xf32>
    %97 = vector.broadcast %96 : vector<1x64xf32> to vector<8x64xf32>
    %98 = arith.mulf %95, %97 : vector<8x64xf32>
    %c2_67 = arith.constant 2 : index
    %c0_68 = arith.constant 0 : index
    %c0_69 = arith.constant 0 : index
    %99 = vector.load %arg4[%c2_67, %c0_68, %c0_69] : memref<9x16x8xf32, #tpu.memory_space<vmem>>, vector<1x16x8xf32>
    %100 = vector.shape_cast %99 : vector<1x16x8xf32> to vector<16x8xf32>
    %cst_70 = arith.constant dense<0.000000e+00> : vector<16x64xf32>
    %101 = tpu.matmul %100, %98, %cst_70 {dimension_numbers = #tpu.dot_dimension_numbers<[1], [0], [0], [1], [0, 0, 1, 1], [], []>} : vector<16x8xf32>, vector<8x64xf32>, vector<16x64xf32> -> vector<16x64xf32>
    %102 = arith.addf %94, %101 : vector<16x64xf32>
    %c1_i32_71 = arith.constant 1 : i32
    %103 = tpu.dynamic_rotate %79 by %c1_i32_71 dim 1 : vector<8x64xf32>, i32 -> vector<8x64xf32>
    %c3_72 = arith.constant 3 : index
    %c0_73 = arith.constant 0 : index
    %104 = vector.load %arg9[%c3_72, %c0_73] : memref<9x64xf32, #tpu.memory_space<vmem>>, vector<1x64xf32>
    %105 = vector.broadcast %104 : vector<1x64xf32> to vector<8x64xf32>
    %106 = arith.mulf %103, %105 : vector<8x64xf32>
    %c3_74 = arith.constant 3 : index
    %c0_75 = arith.constant 0 : index
    %c0_76 = arith.constant 0 : index
    %107 = vector.load %arg4[%c3_74, %c0_75, %c0_76] : memref<9x16x8xf32, #tpu.memory_space<vmem>>, vector<1x16x8xf32>
    %108 = vector.shape_cast %107 : vector<1x16x8xf32> to vector<16x8xf32>
    %cst_77 = arith.constant dense<0.000000e+00> : vector<16x64xf32>
    %109 = tpu.matmul %108, %106, %cst_77 {dimension_numbers = #tpu.dot_dimension_numbers<[1], [0], [0], [1], [0, 0, 1, 1], [], []>} : vector<16x8xf32>, vector<8x64xf32>, vector<16x64xf32> -> vector<16x64xf32>
    %110 = arith.addf %102, %109 : vector<16x64xf32>
    %c4_78 = arith.constant 4 : index
    %c0_79 = arith.constant 0 : index
    %c0_80 = arith.constant 0 : index
    %111 = vector.load %arg4[%c4_78, %c0_79, %c0_80] : memref<9x16x8xf32, #tpu.memory_space<vmem>>, vector<1x16x8xf32>
    %112 = vector.shape_cast %111 : vector<1x16x8xf32> to vector<16x8xf32>
    %cst_81 = arith.constant dense<0.000000e+00> : vector<16x64xf32>
    %113 = tpu.matmul %112, %79, %cst_81 {dimension_numbers = #tpu.dot_dimension_numbers<[1], [0], [0], [1], [0, 0, 1, 1], [], []>} : vector<16x8xf32>, vector<8x64xf32>, vector<16x64xf32> -> vector<16x64xf32>
    %114 = arith.addf %110, %113 : vector<16x64xf32>
    %c63_i32 = arith.constant 63 : i32
    %115 = tpu.dynamic_rotate %79 by %c63_i32 dim 1 : vector<8x64xf32>, i32 -> vector<8x64xf32>
    %c5_82 = arith.constant 5 : index
    %c0_83 = arith.constant 0 : index
    %116 = vector.load %arg9[%c5_82, %c0_83] : memref<9x64xf32, #tpu.memory_space<vmem>>, vector<1x64xf32>
    %117 = vector.broadcast %116 : vector<1x64xf32> to vector<8x64xf32>
    %118 = arith.mulf %115, %117 : vector<8x64xf32>
    %c5_84 = arith.constant 5 : index
    %c0_85 = arith.constant 0 : index
    %c0_86 = arith.constant 0 : index
    %119 = vector.load %arg4[%c5_84, %c0_85, %c0_86] : memref<9x16x8xf32, #tpu.memory_space<vmem>>, vector<1x16x8xf32>
    %120 = vector.shape_cast %119 : vector<1x16x8xf32> to vector<16x8xf32>
    %cst_87 = arith.constant dense<0.000000e+00> : vector<16x64xf32>
    %121 = tpu.matmul %120, %118, %cst_87 {dimension_numbers = #tpu.dot_dimension_numbers<[1], [0], [0], [1], [0, 0, 1, 1], [], []>} : vector<16x8xf32>, vector<8x64xf32>, vector<16x64xf32> -> vector<16x64xf32>
    %122 = arith.addf %114, %121 : vector<16x64xf32>
    %c57_i32 = arith.constant 57 : i32
    %123 = tpu.dynamic_rotate %79 by %c57_i32 dim 1 : vector<8x64xf32>, i32 -> vector<8x64xf32>
    %c6_88 = arith.constant 6 : index
    %c0_89 = arith.constant 0 : index
    %124 = vector.load %arg9[%c6_88, %c0_89] : memref<9x64xf32, #tpu.memory_space<vmem>>, vector<1x64xf32>
    %125 = vector.broadcast %124 : vector<1x64xf32> to vector<8x64xf32>
    %126 = arith.mulf %123, %125 : vector<8x64xf32>
    %c6_90 = arith.constant 6 : index
    %c0_91 = arith.constant 0 : index
    %c0_92 = arith.constant 0 : index
    %127 = vector.load %arg4[%c6_90, %c0_91, %c0_92] : memref<9x16x8xf32, #tpu.memory_space<vmem>>, vector<1x16x8xf32>
    %128 = vector.shape_cast %127 : vector<1x16x8xf32> to vector<16x8xf32>
    %cst_93 = arith.constant dense<0.000000e+00> : vector<16x64xf32>
    %129 = tpu.matmul %128, %126, %cst_93 {dimension_numbers = #tpu.dot_dimension_numbers<[1], [0], [0], [1], [0, 0, 1, 1], [], []>} : vector<16x8xf32>, vector<8x64xf32>, vector<16x64xf32> -> vector<16x64xf32>
    %130 = arith.addf %122, %129 : vector<16x64xf32>
    %c56_i32 = arith.constant 56 : i32
    %131 = tpu.dynamic_rotate %79 by %c56_i32 dim 1 : vector<8x64xf32>, i32 -> vector<8x64xf32>
    %c7_94 = arith.constant 7 : index
    %c0_95 = arith.constant 0 : index
    %132 = vector.load %arg9[%c7_94, %c0_95] : memref<9x64xf32, #tpu.memory_space<vmem>>, vector<1x64xf32>
    %133 = vector.broadcast %132 : vector<1x64xf32> to vector<8x64xf32>
    %134 = arith.mulf %131, %133 : vector<8x64xf32>
    %c7_96 = arith.constant 7 : index
    %c0_97 = arith.constant 0 : index
    %c0_98 = arith.constant 0 : index
    %135 = vector.load %arg4[%c7_96, %c0_97, %c0_98] : memref<9x16x8xf32, #tpu.memory_space<vmem>>, vector<1x16x8xf32>
    %136 = vector.shape_cast %135 : vector<1x16x8xf32> to vector<16x8xf32>
    %cst_99 = arith.constant dense<0.000000e+00> : vector<16x64xf32>
    %137 = tpu.matmul %136, %134, %cst_99 {dimension_numbers = #tpu.dot_dimension_numbers<[1], [0], [0], [1], [0, 0, 1, 1], [], []>} : vector<16x8xf32>, vector<8x64xf32>, vector<16x64xf32> -> vector<16x64xf32>
    %138 = arith.addf %130, %137 : vector<16x64xf32>
    %c55_i32 = arith.constant 55 : i32
    %139 = tpu.dynamic_rotate %79 by %c55_i32 dim 1 : vector<8x64xf32>, i32 -> vector<8x64xf32>
    %c8_100 = arith.constant 8 : index
    %c0_101 = arith.constant 0 : index
    %140 = vector.load %arg9[%c8_100, %c0_101] : memref<9x64xf32, #tpu.memory_space<vmem>>, vector<1x64xf32>
    %141 = vector.broadcast %140 : vector<1x64xf32> to vector<8x64xf32>
    %142 = arith.mulf %139, %141 : vector<8x64xf32>
    %c8_102 = arith.constant 8 : index
    %c0_103 = arith.constant 0 : index
    %c0_104 = arith.constant 0 : index
    %143 = vector.load %arg4[%c8_102, %c0_103, %c0_104] : memref<9x16x8xf32, #tpu.memory_space<vmem>>, vector<1x16x8xf32>
    %144 = vector.shape_cast %143 : vector<1x16x8xf32> to vector<16x8xf32>
    %cst_105 = arith.constant dense<0.000000e+00> : vector<16x64xf32>
    %145 = tpu.matmul %144, %142, %cst_105 {dimension_numbers = #tpu.dot_dimension_numbers<[1], [0], [0], [1], [0, 0, 1, 1], [], []>} : vector<16x8xf32>, vector<8x64xf32>, vector<16x64xf32> -> vector<16x64xf32>
    %146 = arith.addf %138, %145 : vector<16x64xf32>
    %c0_106 = arith.constant 0 : index
    %c0_107 = arith.constant 0 : index
    %147 = vector.load %arg5[%c0_106, %c0_107] : memref<16x1xf32, #tpu.memory_space<vmem>>, vector<16x1xf32>
    %148 = vector.broadcast %147 : vector<16x1xf32> to vector<16x64xf32>
    %149 = arith.addf %146, %148 : vector<16x64xf32>
    %cst_108 = arith.constant 0.000000e+00 : f32
    %150 = vector.broadcast %cst_108 : f32 to vector<16x64xf32>
    %151 = arith.maximumf %149, %150 : vector<16x64xf32>
    %c63_i32_109 = arith.constant 63 : i32
    %152 = tpu.dynamic_rotate %151 by %c63_i32_109 dim 1 : vector<16x64xf32>, i32 -> vector<16x64xf32>
    %153 = arith.maximumf %151, %152 : vector<16x64xf32>
    %c56_i32_110 = arith.constant 56 : i32
    %154 = tpu.dynamic_rotate %153 by %c56_i32_110 dim 1 : vector<16x64xf32>, i32 -> vector<16x64xf32>
    %155 = arith.maximumf %153, %154 : vector<16x64xf32>
    %c0_111 = arith.constant 0 : index
    %c0_112 = arith.constant 0 : index
    %156 = vector.load %arg7[%c0_111, %c0_112] : memref<1x128xf32, #tpu.memory_space<vmem>>, vector<1x128xf32>
    %157 = vector.extract_strided_slice %155 {offsets = [0, 0], sizes = [1, 64], strides = [1, 1]} : vector<16x64xf32> to vector<1x64xf32>
    %c0_113 = arith.constant 0 : index
    %c0_114 = arith.constant 0 : index
    %c0_115 = arith.constant 0 : index
    %158 = vector.load %arg6[%c0_113, %c0_114, %c0_115] : memref<16x64x128xf32, #tpu.memory_space<vmem>>, vector<1x64x128xf32>
    %159 = vector.shape_cast %158 : vector<1x64x128xf32> to vector<64x128xf32>
    %cst_116 = arith.constant dense<0.000000e+00> : vector<1x128xf32>
    %160 = tpu.matmul %157, %159, %cst_116 {dimension_numbers = #tpu.dot_dimension_numbers<[1], [0], [0], [1], [0, 0, 1, 1], [], []>} : vector<1x64xf32>, vector<64x128xf32>, vector<1x128xf32> -> vector<1x128xf32>
    %161 = arith.addf %156, %160 : vector<1x128xf32>
    %162 = vector.extract_strided_slice %155 {offsets = [1, 0], sizes = [1, 64], strides = [1, 1]} : vector<16x64xf32> to vector<1x64xf32>
    %c1_117 = arith.constant 1 : index
    %c0_118 = arith.constant 0 : index
    %c0_119 = arith.constant 0 : index
    %163 = vector.load %arg6[%c1_117, %c0_118, %c0_119] : memref<16x64x128xf32, #tpu.memory_space<vmem>>, vector<1x64x128xf32>
    %164 = vector.shape_cast %163 : vector<1x64x128xf32> to vector<64x128xf32>
    %cst_120 = arith.constant dense<0.000000e+00> : vector<1x128xf32>
    %165 = tpu.matmul %162, %164, %cst_120 {dimension_numbers = #tpu.dot_dimension_numbers<[1], [0], [0], [1], [0, 0, 1, 1], [], []>} : vector<1x64xf32>, vector<64x128xf32>, vector<1x128xf32> -> vector<1x128xf32>
    %166 = arith.addf %161, %165 : vector<1x128xf32>
    %167 = vector.extract_strided_slice %155 {offsets = [2, 0], sizes = [1, 64], strides = [1, 1]} : vector<16x64xf32> to vector<1x64xf32>
    %c2_121 = arith.constant 2 : index
    %c0_122 = arith.constant 0 : index
    %c0_123 = arith.constant 0 : index
    %168 = vector.load %arg6[%c2_121, %c0_122, %c0_123] : memref<16x64x128xf32, #tpu.memory_space<vmem>>, vector<1x64x128xf32>
    %169 = vector.shape_cast %168 : vector<1x64x128xf32> to vector<64x128xf32>
    %cst_124 = arith.constant dense<0.000000e+00> : vector<1x128xf32>
    %170 = tpu.matmul %167, %169, %cst_124 {dimension_numbers = #tpu.dot_dimension_numbers<[1], [0], [0], [1], [0, 0, 1, 1], [], []>} : vector<1x64xf32>, vector<64x128xf32>, vector<1x128xf32> -> vector<1x128xf32>
    %171 = arith.addf %166, %170 : vector<1x128xf32>
    %172 = vector.extract_strided_slice %155 {offsets = [3, 0], sizes = [1, 64], strides = [1, 1]} : vector<16x64xf32> to vector<1x64xf32>
    %c3_125 = arith.constant 3 : index
    %c0_126 = arith.constant 0 : index
    %c0_127 = arith.constant 0 : index
    %173 = vector.load %arg6[%c3_125, %c0_126, %c0_127] : memref<16x64x128xf32, #tpu.memory_space<vmem>>, vector<1x64x128xf32>
    %174 = vector.shape_cast %173 : vector<1x64x128xf32> to vector<64x128xf32>
    %cst_128 = arith.constant dense<0.000000e+00> : vector<1x128xf32>
    %175 = tpu.matmul %172, %174, %cst_128 {dimension_numbers = #tpu.dot_dimension_numbers<[1], [0], [0], [1], [0, 0, 1, 1], [], []>} : vector<1x64xf32>, vector<64x128xf32>, vector<1x128xf32> -> vector<1x128xf32>
    %176 = arith.addf %171, %175 : vector<1x128xf32>
    %177 = vector.extract_strided_slice %155 {offsets = [4, 0], sizes = [1, 64], strides = [1, 1]} : vector<16x64xf32> to vector<1x64xf32>
    %c4_129 = arith.constant 4 : index
    %c0_130 = arith.constant 0 : index
    %c0_131 = arith.constant 0 : index
    %178 = vector.load %arg6[%c4_129, %c0_130, %c0_131] : memref<16x64x128xf32, #tpu.memory_space<vmem>>, vector<1x64x128xf32>
    %179 = vector.shape_cast %178 : vector<1x64x128xf32> to vector<64x128xf32>
    %cst_132 = arith.constant dense<0.000000e+00> : vector<1x128xf32>
    %180 = tpu.matmul %177, %179, %cst_132 {dimension_numbers = #tpu.dot_dimension_numbers<[1], [0], [0], [1], [0, 0, 1, 1], [], []>} : vector<1x64xf32>, vector<64x128xf32>, vector<1x128xf32> -> vector<1x128xf32>
    %181 = arith.addf %176, %180 : vector<1x128xf32>
    %182 = vector.extract_strided_slice %155 {offsets = [5, 0], sizes = [1, 64], strides = [1, 1]} : vector<16x64xf32> to vector<1x64xf32>
    %c5_133 = arith.constant 5 : index
    %c0_134 = arith.constant 0 : index
    %c0_135 = arith.constant 0 : index
    %183 = vector.load %arg6[%c5_133, %c0_134, %c0_135] : memref<16x64x128xf32, #tpu.memory_space<vmem>>, vector<1x64x128xf32>
    %184 = vector.shape_cast %183 : vector<1x64x128xf32> to vector<64x128xf32>
    %cst_136 = arith.constant dense<0.000000e+00> : vector<1x128xf32>
    %185 = tpu.matmul %182, %184, %cst_136 {dimension_numbers = #tpu.dot_dimension_numbers<[1], [0], [0], [1], [0, 0, 1, 1], [], []>} : vector<1x64xf32>, vector<64x128xf32>, vector<1x128xf32> -> vector<1x128xf32>
    %186 = arith.addf %181, %185 : vector<1x128xf32>
    %187 = vector.extract_strided_slice %155 {offsets = [6, 0], sizes = [1, 64], strides = [1, 1]} : vector<16x64xf32> to vector<1x64xf32>
    %c6_137 = arith.constant 6 : index
    %c0_138 = arith.constant 0 : index
    %c0_139 = arith.constant 0 : index
    %188 = vector.load %arg6[%c6_137, %c0_138, %c0_139] : memref<16x64x128xf32, #tpu.memory_space<vmem>>, vector<1x64x128xf32>
    %189 = vector.shape_cast %188 : vector<1x64x128xf32> to vector<64x128xf32>
    %cst_140 = arith.constant dense<0.000000e+00> : vector<1x128xf32>
    %190 = tpu.matmul %187, %189, %cst_140 {dimension_numbers = #tpu.dot_dimension_numbers<[1], [0], [0], [1], [0, 0, 1, 1], [], []>} : vector<1x64xf32>, vector<64x128xf32>, vector<1x128xf32> -> vector<1x128xf32>
    %191 = arith.addf %186, %190 : vector<1x128xf32>
    %192 = vector.extract_strided_slice %155 {offsets = [7, 0], sizes = [1, 64], strides = [1, 1]} : vector<16x64xf32> to vector<1x64xf32>
    %c7_141 = arith.constant 7 : index
    %c0_142 = arith.constant 0 : index
    %c0_143 = arith.constant 0 : index
    %193 = vector.load %arg6[%c7_141, %c0_142, %c0_143] : memref<16x64x128xf32, #tpu.memory_space<vmem>>, vector<1x64x128xf32>
    %194 = vector.shape_cast %193 : vector<1x64x128xf32> to vector<64x128xf32>
    %cst_144 = arith.constant dense<0.000000e+00> : vector<1x128xf32>
    %195 = tpu.matmul %192, %194, %cst_144 {dimension_numbers = #tpu.dot_dimension_numbers<[1], [0], [0], [1], [0, 0, 1, 1], [], []>} : vector<1x64xf32>, vector<64x128xf32>, vector<1x128xf32> -> vector<1x128xf32>
    %196 = arith.addf %191, %195 : vector<1x128xf32>
    %197 = vector.extract_strided_slice %155 {offsets = [8, 0], sizes = [1, 64], strides = [1, 1]} : vector<16x64xf32> to vector<1x64xf32>
    %c8_145 = arith.constant 8 : index
    %c0_146 = arith.constant 0 : index
    %c0_147 = arith.constant 0 : index
    %198 = vector.load %arg6[%c8_145, %c0_146, %c0_147] : memref<16x64x128xf32, #tpu.memory_space<vmem>>, vector<1x64x128xf32>
    %199 = vector.shape_cast %198 : vector<1x64x128xf32> to vector<64x128xf32>
    %cst_148 = arith.constant dense<0.000000e+00> : vector<1x128xf32>
    %200 = tpu.matmul %197, %199, %cst_148 {dimension_numbers = #tpu.dot_dimension_numbers<[1], [0], [0], [1], [0, 0, 1, 1], [], []>} : vector<1x64xf32>, vector<64x128xf32>, vector<1x128xf32> -> vector<1x128xf32>
    %201 = arith.addf %196, %200 : vector<1x128xf32>
    %202 = vector.extract_strided_slice %155 {offsets = [9, 0], sizes = [1, 64], strides = [1, 1]} : vector<16x64xf32> to vector<1x64xf32>
    %c9 = arith.constant 9 : index
    %c0_149 = arith.constant 0 : index
    %c0_150 = arith.constant 0 : index
    %203 = vector.load %arg6[%c9, %c0_149, %c0_150] : memref<16x64x128xf32, #tpu.memory_space<vmem>>, vector<1x64x128xf32>
    %204 = vector.shape_cast %203 : vector<1x64x128xf32> to vector<64x128xf32>
    %cst_151 = arith.constant dense<0.000000e+00> : vector<1x128xf32>
    %205 = tpu.matmul %202, %204, %cst_151 {dimension_numbers = #tpu.dot_dimension_numbers<[1], [0], [0], [1], [0, 0, 1, 1], [], []>} : vector<1x64xf32>, vector<64x128xf32>, vector<1x128xf32> -> vector<1x128xf32>
    %206 = arith.addf %201, %205 : vector<1x128xf32>
    %207 = vector.extract_strided_slice %155 {offsets = [10, 0], sizes = [1, 64], strides = [1, 1]} : vector<16x64xf32> to vector<1x64xf32>
    %c10 = arith.constant 10 : index
    %c0_152 = arith.constant 0 : index
    %c0_153 = arith.constant 0 : index
    %208 = vector.load %arg6[%c10, %c0_152, %c0_153] : memref<16x64x128xf32, #tpu.memory_space<vmem>>, vector<1x64x128xf32>
    %209 = vector.shape_cast %208 : vector<1x64x128xf32> to vector<64x128xf32>
    %cst_154 = arith.constant dense<0.000000e+00> : vector<1x128xf32>
    %210 = tpu.matmul %207, %209, %cst_154 {dimension_numbers = #tpu.dot_dimension_numbers<[1], [0], [0], [1], [0, 0, 1, 1], [], []>} : vector<1x64xf32>, vector<64x128xf32>, vector<1x128xf32> -> vector<1x128xf32>
    %211 = arith.addf %206, %210 : vector<1x128xf32>
    %212 = vector.extract_strided_slice %155 {offsets = [11, 0], sizes = [1, 64], strides = [1, 1]} : vector<16x64xf32> to vector<1x64xf32>
    %c11 = arith.constant 11 : index
    %c0_155 = arith.constant 0 : index
    %c0_156 = arith.constant 0 : index
    %213 = vector.load %arg6[%c11, %c0_155, %c0_156] : memref<16x64x128xf32, #tpu.memory_space<vmem>>, vector<1x64x128xf32>
    %214 = vector.shape_cast %213 : vector<1x64x128xf32> to vector<64x128xf32>
    %cst_157 = arith.constant dense<0.000000e+00> : vector<1x128xf32>
    %215 = tpu.matmul %212, %214, %cst_157 {dimension_numbers = #tpu.dot_dimension_numbers<[1], [0], [0], [1], [0, 0, 1, 1], [], []>} : vector<1x64xf32>, vector<64x128xf32>, vector<1x128xf32> -> vector<1x128xf32>
    %216 = arith.addf %211, %215 : vector<1x128xf32>
    %217 = vector.extract_strided_slice %155 {offsets = [12, 0], sizes = [1, 64], strides = [1, 1]} : vector<16x64xf32> to vector<1x64xf32>
    %c12 = arith.constant 12 : index
    %c0_158 = arith.constant 0 : index
    %c0_159 = arith.constant 0 : index
    %218 = vector.load %arg6[%c12, %c0_158, %c0_159] : memref<16x64x128xf32, #tpu.memory_space<vmem>>, vector<1x64x128xf32>
    %219 = vector.shape_cast %218 : vector<1x64x128xf32> to vector<64x128xf32>
    %cst_160 = arith.constant dense<0.000000e+00> : vector<1x128xf32>
    %220 = tpu.matmul %217, %219, %cst_160 {dimension_numbers = #tpu.dot_dimension_numbers<[1], [0], [0], [1], [0, 0, 1, 1], [], []>} : vector<1x64xf32>, vector<64x128xf32>, vector<1x128xf32> -> vector<1x128xf32>
    %221 = arith.addf %216, %220 : vector<1x128xf32>
    %222 = vector.extract_strided_slice %155 {offsets = [13, 0], sizes = [1, 64], strides = [1, 1]} : vector<16x64xf32> to vector<1x64xf32>
    %c13 = arith.constant 13 : index
    %c0_161 = arith.constant 0 : index
    %c0_162 = arith.constant 0 : index
    %223 = vector.load %arg6[%c13, %c0_161, %c0_162] : memref<16x64x128xf32, #tpu.memory_space<vmem>>, vector<1x64x128xf32>
    %224 = vector.shape_cast %223 : vector<1x64x128xf32> to vector<64x128xf32>
    %cst_163 = arith.constant dense<0.000000e+00> : vector<1x128xf32>
    %225 = tpu.matmul %222, %224, %cst_163 {dimension_numbers = #tpu.dot_dimension_numbers<[1], [0], [0], [1], [0, 0, 1, 1], [], []>} : vector<1x64xf32>, vector<64x128xf32>, vector<1x128xf32> -> vector<1x128xf32>
    %226 = arith.addf %221, %225 : vector<1x128xf32>
    %227 = vector.extract_strided_slice %155 {offsets = [14, 0], sizes = [1, 64], strides = [1, 1]} : vector<16x64xf32> to vector<1x64xf32>
    %c14 = arith.constant 14 : index
    %c0_164 = arith.constant 0 : index
    %c0_165 = arith.constant 0 : index
    %228 = vector.load %arg6[%c14, %c0_164, %c0_165] : memref<16x64x128xf32, #tpu.memory_space<vmem>>, vector<1x64x128xf32>
    %229 = vector.shape_cast %228 : vector<1x64x128xf32> to vector<64x128xf32>
    %cst_166 = arith.constant dense<0.000000e+00> : vector<1x128xf32>
    %230 = tpu.matmul %227, %229, %cst_166 {dimension_numbers = #tpu.dot_dimension_numbers<[1], [0], [0], [1], [0, 0, 1, 1], [], []>} : vector<1x64xf32>, vector<64x128xf32>, vector<1x128xf32> -> vector<1x128xf32>
    %231 = arith.addf %226, %230 : vector<1x128xf32>
    %232 = vector.extract_strided_slice %155 {offsets = [15, 0], sizes = [1, 64], strides = [1, 1]} : vector<16x64xf32> to vector<1x64xf32>
    %c15 = arith.constant 15 : index
    %c0_167 = arith.constant 0 : index
    %c0_168 = arith.constant 0 : index
    %233 = vector.load %arg6[%c15, %c0_167, %c0_168] : memref<16x64x128xf32, #tpu.memory_space<vmem>>, vector<1x64x128xf32>
    %234 = vector.shape_cast %233 : vector<1x64x128xf32> to vector<64x128xf32>
    %cst_169 = arith.constant dense<0.000000e+00> : vector<1x128xf32>
    %235 = tpu.matmul %232, %234, %cst_169 {dimension_numbers = #tpu.dot_dimension_numbers<[1], [0], [0], [1], [0, 0, 1, 1], [], []>} : vector<1x64xf32>, vector<64x128xf32>, vector<1x128xf32> -> vector<1x128xf32>
    %236 = arith.addf %231, %235 : vector<1x128xf32>
    %c0_170 = arith.constant 0 : index
    %c0_171 = arith.constant 0 : index
    %c0_172 = arith.constant 0 : index
    %237 = vector.load %arg11[%c0_170, %c0_171, %c0_172] : memref<1x1x128xf32, #tpu.memory_space<vmem>>, vector<1x1x128xf32>
    %238 = vector.shape_cast %237 : vector<1x1x128xf32> to vector<1x128xf32>
    %239 = vector.shape_cast %236 : vector<1x128xf32> to vector<1x1x128xf32>
    tpu.vector_store %arg11[%c0_170, %c0_171, %c0_172], %239 {strides = array<i32>} : memref<1x1x128xf32, #tpu.memory_space<vmem>>, vector<1x1x128xf32>,
    return
  }
  func.func @transform_0(%arg0: i32) -> (i32, i32, i32) {
    %c0_i32 = arith.constant 0 : i32
    %c0_i32_0 = arith.constant 0 : i32
    %c0_i32_1 = arith.constant 0 : i32
    return %arg0, %c0_i32, %c0_i32_0 : i32, i32, i32
  }
  func.func @transform_1(%arg0: i32) -> (i32, i32, i32) {
    %c0_i32 = arith.constant 0 : i32
    %c0_i32_0 = arith.constant 0 : i32
    %c0_i32_1 = arith.constant 0 : i32
    %c0_i32_2 = arith.constant 0 : i32
    return %c0_i32, %c0_i32_0, %c0_i32_1 : i32, i32, i32
  }
  func.func @transform_2(%arg0: i32) -> (i32, i32) {
    %c0_i32 = arith.constant 0 : i32
    %c0_i32_0 = arith.constant 0 : i32
    %c0_i32_1 = arith.constant 0 : i32
    return %c0_i32, %c0_i32_0 : i32, i32
  }
  func.func @transform_3(%arg0: i32) -> (i32, i32, i32) {
    %c0_i32 = arith.constant 0 : i32
    %c0_i32_0 = arith.constant 0 : i32
    %c0_i32_1 = arith.constant 0 : i32
    %c0_i32_2 = arith.constant 0 : i32
    return %c0_i32, %c0_i32_0, %c0_i32_1 : i32, i32, i32
  }
  func.func @transform_4(%arg0: i32) -> (i32, i32) {
    %c0_i32 = arith.constant 0 : i32
    %c0_i32_0 = arith.constant 0 : i32
    %c0_i32_1 = arith.constant 0 : i32
    return %c0_i32, %c0_i32_0 : i32, i32
  }
  func.func @transform_5(%arg0: i32) -> (i32, i32, i32) {
    %c0_i32 = arith.constant 0 : i32
    %c0_i32_0 = arith.constant 0 : i32
    %c0_i32_1 = arith.constant 0 : i32
    %c0_i32_2 = arith.constant 0 : i32
    return %c0_i32, %c0_i32_0, %c0_i32_1 : i32, i32, i32
  }
  func.func @transform_6(%arg0: i32) -> (i32, i32) {
    %c0_i32 = arith.constant 0 : i32
    %c0_i32_0 = arith.constant 0 : i32
    %c0_i32_1 = arith.constant 0 : i32
    return %c0_i32, %c0_i32_0 : i32, i32
  }
  func.func @transform_7(%arg0: i32) -> (i32, i32) {
    %c0_i32 = arith.constant 0 : i32
    %c0_i32_0 = arith.constant 0 : i32
    %c0_i32_1 = arith.constant 0 : i32
    return %c0_i32, %c0_i32_0 : i32, i32
  }
  func.func @transform_8(%arg0: i32) -> (i32, i32) {
    %c0_i32 = arith.constant 0 : i32
    %c0_i32_0 = arith.constant 0 : i32
    %c0_i32_1 = arith.constant 0 : i32
    return %c0_i32, %c0_i32_0 : i32, i32
  }
  func.func @transform_9(%arg0: i32) -> (i32, i32) {
    %c0_i32 = arith.constant 0 : i32
    %c0_i32_0 = arith.constant 0 : i32
    %c0_i32_1 = arith.constant 0 : i32
    return %c0_i32, %c0_i32_0 : i32, i32
  }
  func.func @transform_10(%arg0: i32) -> (i32, i32, i32) {
    %c0_i32 = arith.constant 0 : i32
    %c0_i32_0 = arith.constant 0 : i32
    %c0_i32_1 = arith.constant 0 : i32
    return %arg0, %c0_i32, %c0_i32_0 : i32, i32, i32
  }
}

</mosaic_0001>

<bundles_post_ra>
// kernel: model_forward.1
= control target key start
LH: loop header
LB: loop body
LE: loop exit
PB: predicated region body
PF: predicated region fallthrough
CT: control target
= control target key end

     0   :  { %s5474_s0 = inlined_call_operand.vmem [shape: f32[2,3,256], index: 0, kind: input, shape index: {}]   ;;  %s5475_s1 = inlined_call_operand.vmem [shape: f32[9,8,3], index: 1, kind: input, shape index: {}]   ;;  %s5476_s2 = inlined_call_operand.vmem [shape: f32[8,1], index: 2, kind: input, shape index: {}]   ;;  %s5477_s3 = inlined_call_operand.vmem [shape: f32[9,16,8], index: 3, kind: input, shape index: {}]   ;;  %s5478_s4 = inlined_call_operand.vmem [shape: f32[16,1], index: 4, kind: input, shape index: {}]   ;;  %s5479_s5 = inlined_call_operand.hbm [shape: f32[16,64,128], index: 5, kind: input, shape index: {}]   ;;  %s5480_s6 = inlined_call_operand.vmem [shape: f32[1,128], index: 6, kind: input, shape index: {}]   ;;  %s5481_s7 = inlined_call_operand.vmem [shape: f32[9,256], index: 7, kind: input, shape index: {}]   ;;  %s5482_s8 = inlined_call_operand.vmem [shape: f32[9,64], index: 8, kind: input, shape index: {}]   ;;  %s5483_s9 = inlined_call_operand.vmem [shape: f32[256,64], index: 9, kind: input, shape index: {}]   ;;  %s5484_s10 = inlined_call_operand.hbm [shape: f32[2,1,128], index: 10, kind: output, shape index: {}]  }
   0x1   :  { %5490 = sst [smem:[#allocation8_spill]] %s5474_s0 }
   0x2   :  { %15 = vsyncpa [#allocation3], 0 }
   0x3   :  { %16 = vsyncpa [#allocation4], 0 }
   0x4   :  { %18 = vsyncpa [#allocation4 + $0x1], 0  ;;  %s4726_s13 = smov 0   ;;  %s4728_s14 = smov 0  }
   0x5   :  { %s4730_s15 = smov 0   ;;  %s4732_s16 = smov 0  }
   0x6 LB: > { %s4747_s17 = sadd.s32 4294967295, %s4639_s16   ;;  %s3791_s18 = sadd.s32 4294967294, %s4639_s16   ;;  %s4639_s16 = sphi %s4732_s16, %s5502_s16   ;;  %s4635_s15 = sphi %s4730_s15, %s5501_s15   ;;  %s4631_s14 = sphi %s4728_s14, %s5500_s14   ;;  %s4627_s13 = sphi %s4726_s13, %s5499_s13  }
   0x7   : > { %s4751_s19 = sadd.s32 1, %s4639_s16   ;;  %s246_s20 = sadd.s32 1, %s4635_s15 }
   0x8   : > { %s243_s21 = ssub.s32 %s4639_s16, %s4751_s19  ;;  %p256_p0 = scmp.ne.s32.totalorder %s4635_s15, %s4631_s14 }
   0x9   : > { %p244_p1 = scmp.eq.s32.totalorder %s243_s21, 0  ;;  %p257_p2 = scmp.eq.s32.totalorder %s4747_s17, 1 }
   0xa   : > { %p262_p3 = scmp.ne.s32.totalorder %s4631_s14, %s4627_s13  ;;  %p263_p4 = scmp.eq.s32.totalorder %s3791_s18, 1 }
   0xb   : > { %s4762_s22 = scalar_select %p244_p1, %s4635_s15, %s246_s20  }
   0xc   : > { %p4764_p5 = por %p257_p2, %p256_p0  ;;  %p4768_p6 = por %p263_p4, %p262_p3 }
   0xd   : > { %p3792_p7 = scmp.ge.s32.totalorder %s4639_s16, 1  ;;  %p270_p8 = scmp.lt.s32.totalorder %s4639_s16, 3 }
   0xe   : > { %s5492_s24 = scalar_select %p4768_p6, 1, 0 }
   0xf   : > { %p4472_p9 = scmp.eq.s32.totalorder %s4747_s17, 0  ;;  %p4775_p10 = pnand %p3792_p7, %p270_p8 }
  0x10   : > { %s4641_s26 = smov [#allocation2]  }
  0x11   : > { %s294_s27 = sshll.u32 %s4641_s26, 4  ;;  %p4464_p11 = pneg %p4775_p10  ;;  %s295_s27 = int_to_ptr.vmem [resolvable:$true] %s294_s27 }
  0x12   : > { %s4560_s28 = scalar_lea.vmem %s295_s27, 16384  ;;  %p4568_p3 = scmp.lt.s32.totalorder %s295_s27, %s295_s27 }
  0x13   : > { %p4465_p12 = pnand %p4472_p9, %p4464_p11  ;;  %p4561_p0 = scmp.ne.s32.totalorder %s295_s27, %s4560_s28 }
  0x14   : > { %p4569_p4 = scmp.lt.s32.totalorder %s4560_s28, %s4560_s28 }
  0x15   : > { %p4551_p13 = pneg %p4465_p12 }
  0x16   : > { %p4570_p6 = por %p4569_p4, %p4568_p3 }
  0x17   : > { %p4563_p1 = pnand %p4561_p0, %p4551_p13 }
  0x19   : > { %p4564_p2 = pneg %p4563_p1 }
  0x1b   : > { %p4571_p7 = pnand %p4570_p6, %p4564_p2 }
  0x1d   : > { %4574 = shalt.err (!%p4571_p7)
}
  0x1e   : > { %s4642_s29 = smov 128   ;;  %s4643_s30 = smov 8  }
  0x1f   : > { %4467 = dma.hbm_to_vmem [thread:$0]  (!%p4465_p12), %s5479_s5, 16384, %s295_s27, [#allocation3], %s4642_s29, %s4642_s29, %s4643_s30  }
  0x20   : > { %330 = sbr.rel (%p4775_p10) target bundleno = 2451 (0x993), region = 60 }
  0x25   : > { %4618 = dma.done.wait (%p4472_p9), [#allocation3], 16384  }
  0x26   : > { %4620 = vsyncadd (%p4472_p9), [#allocation3], 4294950912  ;;  %p367_p8 = scmp.lt.s32.totalorder %s4747_s17, 1  ;;  %s5494_s0 = sld [smem:[#allocation8_spill]]  ;;  %v4644_v1 = vmov 0.0   ;;  %v4651_v3 = vmov 0   ;;  %v380_v5 = vlaneseq }
  0x27   : > { %499 = vmatprep.mubr.f32.mxu0 %v4644_v1  ;;  %579 = vmatprep.mubr.f32.mxu1 %v4644_v1  ;;  %s4645_s25 = smov 17   ;;  %s4646_s27 = smov 16   ;;  %v1304_v4 = vld [vmem:[%s5476_s2] sm:$0xff]  ;;  %vm428_vm1 = vcmask 1042432   ;;  %vm424_vm5 = vcmask 23552   ;;  %v3800_v40 = vld [vmem:[%s5475_s1 + $0x8] sm:$0xff] }
  0x28   : > { %s368_s18 = scalar_select %p367_p8, %s4747_s17, 1  ;;  %4536 = vset.pattern.permute.xlu0 %v4651_v3  ;;  %4547 = vset.pattern.permute.xlu1 %v4651_v3  ;;  %v388_v6 = vshrl.u32 %v380_v5, 7  ;;  %v4830_v7 = vand.u32 127, %v380_v5  ;;  %v385_v10 = vld [vmem:[%s5481_s7] ss:$8 sm:$0x3] }
  0x29   : > { %s4647_s29 = smov 15   ;;  %s5487_s30 = smov 1   ;;  %v3799_v15 = vld [vmem:[%s5481_s7 + $0x1] ss:$8 sm:$0x3]  ;;  %v3808_v52 = vld [vmem:[%s5475_s1 + $0x10] sm:$0xff] }
  0x2a   : > { %s3902_s20 = sshll.u32 %s368_s18, 3  ;;  %s5485_s11 = smov 127   ;;  %v4832_v8 = vsub.s32 0, %v388_v6  ;;  %v4834_v9 = vsub.s32 1, %v388_v6  ;;  %vm382_vm0 = vcmp.lt.s32.totalorder %v4830_v7, 17  ;;  %vm590_vm2 = vcmp.lt.s32.totalorder %v4830_v7, 15 }
  0x2b   : > { %s4650_s12 = smov 113   ;;  %s4652_s18 = smov 112   ;;  %vm404_vm3 = vcmp.lt.s32.totalorder %v4830_v7, 16  ;;  %v3807_v20 = vld [vmem:[%s5481_s7 + $0x2] ss:$8 sm:$0x3] }
  0x2c   : > { %s371_s28 = scalar_lea.vmem %s5494_s0, %s3902_s20  ;;  %s4653_s20 = smov 111   ;;  %v390_v13 = vrot.slane %v385_v10, %v4832_v8  ;;  %v394_v14 = vrot.slane %v385_v10, %v4834_v9  ;;  %v3812_v21 = vld [vmem:[%s5481_s7 + $0x3] ss:$8 sm:$0x3]  ;;  %v413_v24 = vrot.slane %v3799_v15, %v4832_v8  ;;  %v417_v25 = vrot.slane %v3799_v15, %v4834_v9  ;;  %v3813_v53 = vld [vmem:[%s5475_s1 + $0x18] sm:$0xff] }
  0x2d   : > { %v4797_v0 = vld [vmem:[%s371_s28] sm:$0x77]  ;;  %v599_v27 = vrot.slane %v3807_v20, %v4832_v8  ;;  %v603_v28 = vrot.slane %v3807_v20, %v4834_v9  ;;  %vm696_vm4 = vcmp.lt.s32.totalorder %v4830_v7, 1  ;;  %v705_v31 = vrot.slane %v3812_v21, %v4832_v8  ;;  %v3831_v62 = vld [vmem:[%s5481_s7 + $0x7] ss:$8 sm:$0x3] }
  0x2e   : > { %376 = vrot.lane.b32.xlu1 %v4797_v0, %s4645_s25  ;;  %400 = vrot.lane.b32.xlu0 %v4797_v0, %s4646_s27  ;;  %v4805_v2 = vcombine.high %v4797_v0, %v4797_v0  ;;  %v399_v26 = vld [vmem:[%s5475_s1] sm:$0xff]  ;;  %v709_v38 = vrot.slane %v3812_v21, %v4834_v9  ;;  %vm884_vm6 = vcmp.lt.s32.totalorder %v4830_v7, 127  ;;  %vm990_vm7 = vcmp.lt.s32.totalorder %v4830_v7, 113  ;;  %s5495_s28 = smov 1   ;;  %s4663_s0 = smov 73  }
  0x2f   : > { %v3821_v39 = vld [vmem:[%s5481_s7 + $0x5] ss:$8 sm:$0x3]  ;;  %v3826_v51 = vld [vmem:[%s5481_s7 + $0x6] ss:$8 sm:$0x3] }
  0x30   : > { %v893_v47 = vrot.slane %v3821_v39, %v4832_v8  ;;  %v897_v50 = vrot.slane %v3821_v39, %v4834_v9  ;;  %v999_v58 = vrot.slane %v3826_v51, %v4832_v8  ;;  %v1003_v61 = vrot.slane %v3826_v51, %v4834_v9  ;;  %v3817_v63 = vld [vmem:[%s5475_s1 + $0x20] sm:$0xff]  ;;  %s4664_s21 = smov 71   ;;  %s5497_s26 = smov 127  }
  0x31   : > { %vm1096_vm8 = vcmp.lt.s32.totalorder %v4830_v7, 112  ;;  %vm1202_vm9 = vcmp.lt.s32.totalorder %v4830_v7, 111  ;;  %v3849_v7 = vld [vmem:[%s5482_s8 + $0x2] ss:$0 sm:$0xff]  ;;  %vm1432_vm10 = vcmask 1048064   ;;  %vm1468_vm11 = vcmask 64512  }
  0x32   : > { %586 = vrot.lane.b32.xlu0 %v4797_v0, %s4647_s29  ;;  %378 = vrot.lane.b32.xlu1 %v4805_v2, %s4645_s25  ;;  %s4660_s25 = smov 7   ;;  %vm4669_vm12 = vmmov 0   ;;  %vm2390_vm13 = vcmask 523264  }
  0x36   : > { %588 = vrot.lane.b32.xlu1 %v4805_v2, %s4647_s29  ;;  %402 = vrot.lane.b32.xlu0 %v4805_v2, %s4646_s27  ;;  %s4655_s27 = smov 56   ;;  %s4668_s29 = smov 119  }
  0x3a   : > { %694 = vrot.lane.b32.xlu1 %v4805_v2, %s5487_s30  ;;  %692 = vrot.lane.b32.xlu0 %v4797_v0, %s5487_s30  ;;  %s5488_s30 = smov 64  }
  0x3e   : > { %882 = vrot.lane.b32.xlu1 %v4805_v2, %s5485_s11  ;;  %880 = vrot.lane.b32.xlu0 %v4797_v0, %s5485_s11 }
  0x42   : > { %988 = vrot.lane.b32.xlu1 %v4805_v2, %s4650_s12  ;;  %986 = vrot.lane.b32.xlu0 %v4797_v0, %s4650_s12  ;;  %s4658_s12 = smov 55  }
  0x46   : > { %1094 = vrot.lane.b32.xlu1 %v4805_v2, %s4652_s18  ;;  %1092 = vrot.lane.b32.xlu0 %v4797_v0, %s4652_s18 }
  0x4a   : > { %1200 = vrot.lane.b32.xlu1 %v4805_v2, %s4653_s20  ;;  %1198 = vrot.lane.b32.xlu0 %v4797_v0, %s4653_s20  ;;  %s4656_s20 = smov 57  }
  0x4e   : > { %1307 = vperm.xlu0 %4536, %v1304_v4  }
  0xa0   : > { %v377_v11 = vpop.permute.xlu1 %376  ;;  %v401_v12 = vpop.permute.xlu0 %400 }
  0xa4   : > { %v587_v16 = vpop.permute.xlu0 %586  ;;  %v379_v17 = vpop.permute.xlu1 %378 }
  0xa5   : > { %v383_v18 = vsel %vm382_vm0, %v377_v11, %v379_v17  ;;  %v384_v19 = vsel %vm382_vm0, %v379_v17, %v377_v11 }
  0xa6   : > { %v397_v22 = vmul.f32 %v390_v13, %v384_v19  ;;  %v398_v23 = vmul.f32 %v394_v14, %v383_v18  ;;  %v3827_v13 = vld [vmem:[%s5475_s1 + $0x30] sm:$0xff] }
  0xa7   : > { %v3836_v14 = vld [vmem:[%s5481_s7 + $0x10] ss:$8 sm:$0x3] }
  0xa8   : > { %3804 = vmatprep.subr.msk.mxu1 %vm428_vm1, %v398_v23  ;;  %v589_v29 = vpop.permute.xlu1 %588  ;;  %v403_v30 = vpop.permute.xlu0 %402  ;;  %v1211_v21 = vrot.slane %v3836_v14, %v4832_v8  ;;  %v3832_v23 = vld [vmem:[%s5475_s1 + $0x38] sm:$0xff] }
  0xa9   : > { %v591_v32 = vsel %vm590_vm2, %v587_v16, %v589_v29  ;;  %v405_v33 = vsel %vm404_vm3, %v401_v12, %v403_v30  ;;  %v406_v34 = vsel %vm404_vm3, %v403_v30, %v401_v12  ;;  %3805 = vmatpush1.msk.msra.mxu1 %vm428_vm1, %v397_v22  ;;  %v592_v35 = vsel %vm590_vm2, %v589_v29, %v587_v16 }
  0xaa   : > { %v420_v36 = vmul.f32 %v413_v24, %v406_v34  ;;  %v421_v37 = vmul.f32 %v417_v25, %v405_v33  ;;  %3806 = vmatmul.mubr.msk.f32.vlgmr.msra.gmra.mxu1 %vm424_vm5, %v399_v26  ;;  %v607_v41 = vmul.f32 %v603_v28, %v591_v32  ;;  %v606_v44 = vmul.f32 %v599_v27, %v592_v35 }
  0xab   : > { %789 = vmatprep.mubr.f32.mxu1 %v4644_v1  ;;  %v1109_v12 = vrot.slane %v3831_v62, %v4834_v9  ;;  %v1215_v22 = vrot.slane %v3836_v14, %v4834_v9 }
  0xac   : > { %v695_v42 = vpop.permute.xlu1 %694  ;;  %3801 = vmatprep.subr.msk.mxu0 %vm428_vm1, %v421_v37  ;;  %v693_v43 = vpop.permute.xlu0 %692 }
  0xad   : > { %v697_v45 = vsel %vm696_vm4, %v693_v43, %v695_v42  ;;  %v698_v46 = vsel %vm696_vm4, %v695_v42, %v693_v43  ;;  %3802 = vmatpush1.msk.msra.mxu0 %vm428_vm1, %v420_v36 }
  0xae   : > { %v712_v48 = vmul.f32 %v705_v31, %v698_v46  ;;  %v713_v49 = vmul.f32 %v709_v38, %v697_v45  ;;  %3803 = vmatmul.mubr.msk.f32.vlgmr.msra.gmra.mxu0 %vm424_vm5, %v3800_v40  ;;  %3809 = vmatprep.subr.msk.mxu0 %vm428_vm1, %v607_v41 }
  0xaf   : > { %3810 = vmatpush1.msk.msra.mxu0 %vm428_vm1, %v606_v44  ;;  %683 = vmatprep.mubr.f32.mxu0 %v4644_v1 }
  0xb0   : > { %v883_v54 = vpop.permute.xlu1 %882  ;;  %3814 = vmatprep.subr.msk.mxu1 %vm428_vm1, %v713_v49  ;;  %v881_v55 = vpop.permute.xlu0 %880  ;;  %3818 = vmatprep.subr.msk.mxu0 %vm428_vm1, %v4805_v2  ;;  %v3822_v2 = vld [vmem:[%s5475_s1 + $0x28] sm:$0xff] }
  0xb1   : > { %v885_v56 = vsel %vm884_vm6, %v881_v55, %v883_v54  ;;  %v886_v57 = vsel %vm884_vm6, %v883_v54, %v881_v55  ;;  %3815 = vmatpush1.msk.msra.mxu1 %vm428_vm1, %v712_v48 }
  0xb2   : > { %v900_v59 = vmul.f32 %v893_v47, %v885_v56  ;;  %v901_v60 = vmul.f32 %v897_v50, %v886_v57  ;;  %3811 = vmatmul.mubr.msk.f32.vlgmr.msra.gmra.mxu0 %vm424_vm5, %v3808_v52  ;;  %3816 = vmatmul.mubr.msk.f32.vlgmr.msra.gmra.mxu1 %vm424_vm5, %v3813_v53 }
  0xb3   : > { %3819 = vmatpush1.msk.msra.mxu0 %vm428_vm1, %v4797_v0  ;;  %871 = vmatprep.mubr.f32.mxu0 %v4644_v1  ;;  %v1105_v0 = vrot.slane %v3831_v62, %v4832_v8  ;;  %v3837_v8 = vld [vmem:[%s5475_s1 + $0x40] sm:$0xff] }
  0xb4   : > { %v989_v3 = vpop.permute.xlu1 %988  ;;  %3823 = vmatprep.subr.msk.mxu1 %vm428_vm1, %v901_v60  ;;  %v987_v4 = vpop.permute.xlu0 %986  ;;  %977 = vmatprep.mubr.f32.mxu1 %v4644_v1 }
  0xb5   : > { %v991_v5 = vsel %vm990_vm7, %v987_v4, %v989_v3  ;;  %v992_v6 = vsel %vm990_vm7, %v989_v3, %v987_v4  ;;  %3824 = vmatpush1.msk.msra.mxu1 %vm428_vm1, %v900_v59  ;;  %v1361_v4 = vld [vmem:[%s5483_s9 + $0xf8] sm:$0xff] }
  0xb6   : > { %v1006_v10 = vmul.f32 %v999_v58, %v991_v5  ;;  %v1007_v11 = vmul.f32 %v1003_v61, %v992_v6  ;;  %3820 = vmatmul.mubr.msk.f32.vlgmr.msra.gmra.mxu0 %vm424_vm5, %v3817_v63  ;;  %3825 = vmatmul.mubr.msk.f32.vlgmr.msra.gmra.mxu1 %vm424_vm5, %v3822_v2  ;;  %v1345_v5 = vld [vmem:[%s5483_s9 + $0x78] sm:$0xff]  ;;  %v1360_v6 = vld [vmem:[%s5483_s9 + $0xf0] sm:$0xff] }
  0xb7   : > { %1083 = vmatprep.mubr.f32.mxu0 %v4644_v1  ;;  %1189 = vmatprep.mubr.f32.mxu1 %v4644_v1 }
  0xb8   : > { %v1095_v15 = vpop.permute.xlu1 %1094  ;;  %3828 = vmatprep.subr.msk.mxu0 %vm428_vm1, %v1007_v11  ;;  %v1093_v16 = vpop.permute.xlu0 %1092 }
  0xb9   : > { %v1097_v17 = vsel %vm1096_vm8, %v1093_v16, %v1095_v15  ;;  %v1098_v18 = vsel %vm1096_vm8, %v1095_v15, %v1093_v16  ;;  %3829 = vmatpush1.msk.msra.mxu0 %vm428_vm1, %v1006_v10  ;;  %v1358_v15 = vld [vmem:[%s5483_s9 + $0xe0] sm:$0xff] }
  0xba   : > { %v1112_v19 = vmul.f32 %v1105_v0, %v1097_v17  ;;  %v1113_v20 = vmul.f32 %v1109_v12, %v1098_v18  ;;  %3830 = vmatmul.mubr.msk.f32.vlgmr.msra.gmra.mxu0 %vm424_vm5, %v3827_v13  ;;  %v1344_v0 = vld [vmem:[%s5483_s9 + $0x70] sm:$0xff]  ;;  %v1359_v12 = vld [vmem:[%s5483_s9 + $0xe8] sm:$0xff]  ;;  %v1342_v16 = vld [vmem:[%s5483_s9 + $0x60] sm:$0xff] }
  0xbb   : > { %1295 = vmatprep.mubr.f32.mxu0 %v4644_v1  ;;  %v1343_v13 = vld [vmem:[%s5483_s9 + $0x68] sm:$0xff]  ;;  %v1357_v17 = vld [vmem:[%s5483_s9 + $0xd8] sm:$0xff] }
  0xbc   : > { %v1201_v24 = vpop.permute.xlu1 %1200  ;;  %3833 = vmatprep.subr.msk.mxu1 %vm428_vm1, %v1113_v20  ;;  %v1199_v25 = vpop.permute.xlu0 %1198  ;;  %v1341_v18 = vld [vmem:[%s5483_s9 + $0x58] sm:$0xff]  ;;  %v1340_v20 = vld [vmem:[%s5483_s9 + $0x50] sm:$0xff] }
  0xbd   : > { %v1203_v26 = vsel %vm1202_vm9, %v1199_v25, %v1201_v24  ;;  %v1204_v27 = vsel %vm1202_vm9, %v1201_v24, %v1199_v25  ;;  %3834 = vmatpush1.msk.msra.mxu1 %vm428_vm1, %v1112_v19  ;;  %v1356_v19 = vld [vmem:[%s5483_s9 + $0xd0] sm:$0xff]  ;;  %v1338_v24 = vld [vmem:[%s5483_s9 + $0x40] sm:$0xff]  ;;  %v1353_v25 = vld [vmem:[%s5483_s9 + $0xb8] sm:$0xff] }
  0xbe   : > { %v1218_v28 = vmul.f32 %v1211_v21, %v1203_v26  ;;  %v1219_v29 = vmul.f32 %v1215_v22, %v1204_v27  ;;  %3835 = vmatmul.mubr.msk.f32.vlgmr.msra.gmra.mxu1 %vm424_vm5, %v3832_v23  ;;  %3903 = vmatprep.subr.mxu1 %v1361_v4  ;;  %v1355_v21 = vld [vmem:[%s5483_s9 + $0xc8] sm:$0xff]  ;;  %v1354_v23 = vld [vmem:[%s5483_s9 + $0xc0] sm:$0xff]  ;;  %v1337_v26 = vld [vmem:[%s5483_s9 + $0x38] sm:$0xff] }
  0xbf   : > { %3904 = vmatpush3.msra.mxu1 %v1345_v5  ;;  %v1339_v22 = vld [vmem:[%s5483_s9 + $0x48] sm:$0xff]  ;;  %v1352_v27 = vld [vmem:[%s5483_s9 + $0xb0] sm:$0xff] }
  0xc0   : > { %3838 = vmatprep.subr.msk.mxu0 %vm428_vm1, %v1219_v29  ;;  %3905 = vmatprep.subr.mxu1 %v1360_v6  ;;  %v1351_v29 = vld [vmem:[%s5483_s9 + $0xa8] sm:$0xff]  ;;  %v3843_v4 = vld [vmem:[%s5477_s3 + $0x10] sm:$0xff] }
  0xc1   : > { %3839 = vmatpush1.msk.msra.mxu0 %vm428_vm1, %v1218_v28  ;;  %3906 = vmatpush3.msra.mxu1 %v1344_v0  ;;  %v1336_v28 = vld [vmem:[%s5483_s9 + $0x30] sm:$0xff] }
  0xc2   : > { %3840 = vmatmul.mubr.msk.f32.vlgmr.msra.gmra.mxu0 %vm424_vm5, %v3837_v8  ;;  %3907 = vmatprep.subr.mxu1 %v1359_v12  ;;  %v1335_v8 = vld [vmem:[%s5483_s9 + $0x28] sm:$0xff] }
  0xc3   : > { %3908 = vmatpush3.msra.mxu1 %v1343_v13  ;;  %4111 = vmatprep.mubr.msk.f32.mxu0 %vm1468_vm11, %v3843_v4 }
  0xc4   : > { %3909 = vmatprep.subr.mxu1 %v1358_v15 }
  0xc5   : > { %3910 = vmatpush3.msra.mxu1 %v1342_v16 }
  0xc6   : > { %3911 = vmatprep.subr.mxu1 %v1357_v17 }
  0xc7   : > { %3912 = vmatpush3.msra.mxu1 %v1341_v18 }
  0xc8   : > { %3913 = vmatprep.subr.mxu1 %v1356_v19 }
  0xc9   : > { %v1308_v59 = vpop.permute.xlu0 %1307  ;;  %3914 = vmatpush3.msra.mxu1 %v1340_v20 }
  0xca   : > { %3915 = vmatprep.subr.mxu1 %v1355_v21 }
  0xcb   : > { %3916 = vmatpush3.msra.mxu1 %v1339_v22 }
  0xcc   : > { %3917 = vmatprep.subr.mxu1 %v1354_v23 }
  0xcd   : > { %3918 = vmatpush3.msra.mxu1 %v1338_v24 }
  0xce   : > { %3919 = vmatprep.subr.mxu1 %v1353_v25  ;;  %v2321_v25 = vld [vmem:[%s5478_s4] sm:$0xff] }
  0xcf   : > { %3920 = vmatpush3.msra.mxu1 %v1337_v26  ;;  %v3879_v26 = vld [vmem:[%s5477_s3 + $0x80] sm:$0xff] }
  0xd0   : > { %3921 = vmatprep.subr.mxu1 %v1352_v27  ;;  %v2322_v27 = vld [vmem:[%s5478_s4 + $0x8] sm:$0xff] }
  0xd1   : > { %3922 = vmatpush3.msra.mxu1 %v1336_v28 }
  0xd2   : > { %3923 = vmatprep.subr.mxu1 %v1351_v29  ;;  %v3844_v29 = vld [vmem:[%s5477_s3 + $0x18] sm:$0xff] }
  0xd3   : > { %3924 = vmatpush3.msra.mxu1 %v1335_v8  ;;  %v1449_v8 = vld [vmem:[%s5477_s3] sm:$0xff] }
 0x16a   : > { %v581_v9 = vpop.f32.mrf.mxu1 }
 0x16c   : > { %v583_v31 = vpop.f32.mrf.mxu1 }
 0x16e   : > { %v501_v30 = vpop.f32.mrf.mxu0 }
 0x16f   : > { %v582_v32 = vadd.f32 %v581_v9, %v501_v30  ;;  %v1350_v9 = vld [vmem:[%s5483_s9 + $0xa0] sm:$0xff] }
 0x170   : > { %v503_v33 = vpop.f32.mrf.mxu0  ;;  %v1334_v30 = vld [vmem:[%s5483_s9 + $0x20] sm:$0xff]  ;;  %3925 = vmatprep.subr.mxu1 %v1350_v9 }
 0x171   : > { %v584_v34 = vadd.f32 %v583_v31, %v503_v33  ;;  %v1349_v31 = vld [vmem:[%s5483_s9 + $0x98] sm:$0xff]  ;;  %3926 = vmatpush3.msra.mxu1 %v1334_v30  ;;  %v1348_v33 = vld [vmem:[%s5483_s9 + $0x90] sm:$0xff] }
 0x172   : > { %v685_v35 = vpop.f32.mrf.mxu0  ;;  %v791_v36 = vpop.f32.mrf.mxu1  ;;  %3927 = vmatprep.subr.mxu1 %v1349_v31  ;;  %v1450_v31 = vld [vmem:[%s5477_s3 + $0x8] sm:$0xff] }
 0x173   : > { %v690_v37 = vadd.f32 %v685_v35, %v582_v32  ;;  %v1333_v32 = vld [vmem:[%s5483_s9 + $0x18] sm:$0xff]  ;;  %v1347_v35 = vld [vmem:[%s5483_s9 + $0x88] sm:$0xff] }
 0x174   : > { %v687_v38 = vpop.f32.mrf.mxu0  ;;  %v793_v39 = vpop.f32.mrf.mxu1  ;;  %3928 = vmatpush3.msra.mxu1 %v1333_v32  ;;  %v3850_v32 = vld [vmem:[%s5477_s3 + $0x20] sm:$0xff] }
 0x175   : > { %v691_v40 = vadd.f32 %v687_v38, %v584_v34  ;;  %v796_v41 = vadd.f32 %v791_v36, %v690_v37  ;;  %3929 = vmatprep.subr.mxu1 %v1348_v33  ;;  %v1332_v34 = vld [vmem:[%s5483_s9 + $0x10] sm:$0xff]  ;;  %v1331_v36 = vld [vmem:[%s5483_s9 + $0x8] sm:$0xff]  ;;  %v1346_v37 = vld [vmem:[%s5483_s9 + $0x80] sm:$0xff] }
 0x176   : > { %v873_v42 = vpop.f32.mrf.mxu0  ;;  %v979_v43 = vpop.f32.mrf.mxu1  ;;  %3930 = vmatpush3.msra.mxu1 %v1332_v34  ;;  %v1330_v38 = vld [vmem:[%s5483_s9] sm:$0xff]  ;;  %v3851_v34 = vld [vmem:[%s5477_s3 + $0x28] sm:$0xff] }
 0x177   : > { %v797_v44 = vadd.f32 %v793_v39, %v691_v40  ;;  %v878_v45 = vadd.f32 %v873_v42, %v796_v41  ;;  %3931 = vmatprep.subr.mxu1 %v1347_v35  ;;  %v3855_v35 = vld [vmem:[%s5477_s3 + $0x30] sm:$0xff] }
 0x178   : > { %v875_v46 = vpop.f32.mrf.mxu0  ;;  %v981_v49 = vpop.f32.mrf.mxu1  ;;  %3932 = vmatpush3.msra.mxu1 %v1331_v36 }
 0x179   : > { %v879_v47 = vadd.f32 %v875_v46, %v797_v44  ;;  %v984_v48 = vadd.f32 %v979_v43, %v878_v45  ;;  %3933 = vmatprep.subr.mxu1 %v1346_v37  ;;  %v3856_v37 = vld [vmem:[%s5477_s3 + $0x38] sm:$0xff] }
 0x17a   : > { %v1085_v50 = vpop.f32.mrf.mxu0  ;;  %3934 = vmatpush3.msra.mxu1 %v1330_v38 }
 0x17b   : > { %v985_v51 = vadd.f32 %v981_v49, %v879_v47  ;;  %v1090_v52 = vadd.f32 %v1085_v50, %v984_v48 }
 0x17c   : > { %v1087_v53 = vpop.f32.mrf.mxu0 }
 0x17d   : > { %v1091_v56 = vadd.f32 %v1087_v53, %v985_v51 }
 0x17e   : > { %v1191_v54 = vpop.f32.mrf.mxu1 }
 0x17f   : > { %v1196_v57 = vadd.f32 %v1191_v54, %v1090_v52 }
 0x180   : > { %v1193_v55 = vpop.f32.mrf.mxu1 }
 0x181   : > { %v1197_v60 = vadd.f32 %v1193_v55, %v1091_v56 }
 0x182   : > { %v1297_v58 = vpop.f32.mrf.mxu0 }
 0x183   : > { %v1302_v61 = vadd.f32 %v1297_v58, %v1196_v57  ;;  %v3842_v57 = vld [vmem:[%s5482_s8 + $0x1] ss:$0 sm:$0xff]  ;;  %v3863_v58 = vld [vmem:[%s5482_s8 + $0x5] ss:$0 sm:$0xff] }
 0x184   : > { %v1299_v62 = vpop.f32.mrf.mxu0 }
 0x185   : > { %v1303_v63 = vadd.f32 %v1299_v62, %v1197_v60  ;;  %v4967_v2 = vadd.f32 %v1308_v59, %v1302_v61  ;;  %v3841_v62 = vld [vmem:[%s5482_s8] ss:$0 sm:$0xff] }
 0x187   : > { %v4969_v3 = vadd.f32 %v1308_v59, %v1303_v63  ;;  %v1312_v10 = vmax.f32 %v4967_v2, 0.0  ;;  %v3873_v59 = vld [vmem:[%s5482_s8 + $0x7] ss:$0 sm:$0xff]  ;;  %v3854_v63 = vld [vmem:[%s5482_s8 + $0x3] ss:$0 sm:$0xff] }
 0x188   : > { %v3868_v2 = vld [vmem:[%s5482_s8 + $0x6] ss:$0 sm:$0xff] }
 0x189   : > { %v1313_v11 = vmax.f32 %v4969_v3, 0.0  ;;  %v3878_v3 = vld [vmem:[%s5482_s8 + $0x8] ss:$0 sm:$0xff] }
 0x18b   : > { %v4537_v14 = vpack.i.bf16 %v1313_v11, %v1312_v10 }
 0x18d   : > { %4538 = vrot.lane.b32.xlu1 %v4537_v14, %s5485_s11  ;;  %s5496_s11 = smov 64  }
 0x1ff   : > { %v4539_v39 = vpop.permute.xlu1 %4538 }
 0x200   : > { %v4541_v40 = vunpack.i.h.bf16 %v4539_v39  ;;  %v4540_v41 = vunpack.i.l.bf16 %v4539_v39  ;;  %v3859_v39 = vld [vmem:[%s5477_s3 + $0x40] sm:$0xff] }
 0x202   : > { %v1318_v42 = vsel %vm884_vm6, %v4540_v41, %v4541_v40  ;;  %v1319_v43 = vsel %vm884_vm6, %v4541_v40, %v4540_v41  ;;  %v3880_v40 = vld [vmem:[%s5477_s3 + $0x88] sm:$0xff] }
 0x203   : > { %v1320_v44 = vmax.f32 %v1312_v10, %v1318_v42  ;;  %v1321_v45 = vmax.f32 %v1313_v11, %v1319_v43  ;;  %v3860_v42 = vld [vmem:[%s5477_s3 + $0x48] sm:$0xff]  ;;  %v3864_v43 = vld [vmem:[%s5477_s3 + $0x50] sm:$0xff] }
 0x205   : > { %v4542_v46 = vpack.i.bf16 %v1321_v45, %v1320_v44 }
 0x207   : > { %4543 = vrot.lane.b32.xlu1 %v4542_v46, %s4652_s18  ;;  %s4657_s18 = smov 8  }
 0x279   : > { %v4544_v47 = vpop.permute.xlu1 %4543 }
 0x27a   : > { %v4546_v48 = vunpack.i.h.bf16 %v4544_v47  ;;  %v4545_v49 = vunpack.i.l.bf16 %v4544_v47  ;;  %v3870_v47 = vld [vmem:[%s5477_s3 + $0x68] sm:$0xff] }
 0x27c   : > { %v1326_v50 = vsel %vm1096_vm8, %v4545_v49, %v4546_v48  ;;  %v1327_v51 = vsel %vm1096_vm8, %v4546_v48, %v4545_v49  ;;  %v3874_v48 = vld [vmem:[%s5477_s3 + $0x70] sm:$0xff]  ;;  %v3875_v49 = vld [vmem:[%s5477_s3 + $0x78] sm:$0xff] }
 0x27d   : > { %v1328_v52 = vmax.f32 %v1320_v44, %v1326_v50  ;;  %v1329_v53 = vmax.f32 %v1321_v45, %v1327_v51  ;;  %v3865_v44 = vld [vmem:[%s5477_s3 + $0x58] sm:$0xff]  ;;  %v3869_v45 = vld [vmem:[%s5477_s3 + $0x60] sm:$0xff] }
 0x27f   : > { %1426 = vmatprep.mubr.f32.mxu1 %v1329_v53 }
 0x280   : > { %1427 = vmatmul.mubr.f32.vlgmr.msra.gmra.mxu1 %v1328_v52 }
 0x281   : > { %4151 = vmatprep.mubr.msk.f32.mxu1 %vm1468_vm11, %v3879_v26 }
 0x340   : > { %v3935_v54 = vpop.f32.mrf.mxu1 }
 0x342   : > { %v3936_v55 = vpop.f32.mrf.mxu1 }
 0x343   : > { %v5087_v56 = vadd.f32 %v3936_v55, %v3935_v54 }
 0x345   : > { %1433 = vrot.lane.b32.xlu0 %v5087_v56, %s5488_s30  ;;  %s4659_s30 = smov 63  }
 0x349   : > { %1457 = vrot.lane.b32.xlu0 %v3842_v57, %s4655_s27  ;;  %s4661_s27 = smov 9  }
 0x34d   : > { %1641 = vrot.lane.b32.xlu0 %v3849_v7, %s4656_s20  ;;  %s4662_s20 = smov 72  }
 0x351   : > { %1927 = vrot.lane.b32.xlu0 %v3863_v58, %s5495_s28  ;;  %s4666_s28 = smov 121  }
 0x355   : > { %2127 = vrot.lane.b32.xlu0 %v3873_v59, %s4657_s18 }
 0x3b7   : > { %v1434_v60 = vpop.permute.xlu0 %1433 }
 0x3b8   : > { %v1435_v61 = vsel %vm1432_vm10, %v1434_v60, %v5087_v56 }
 0x3b9   : > { %1436 = vrot.lane.b32.xlu1 %v1435_v61, %s5496_s11 }
 0x3bb   : > { %v1458_v5 = vpop.permute.xlu0 %1457 }
 0x3bd   : > { %1445 = vrot.lane.b32.xlu1 %v3841_v62, %s4658_s12  ;;  %s3899_s12 = sshll.u32 %s4747_s17, 4  ;;  %s4670_s17 = smov [#allocation5]  }
 0x3bf   : > { %v1642_v6 = vpop.permute.xlu0 %1641 }
 0x3c1   : > { %1741 = vrot.lane.b32.xlu1 %v3854_v63, %s4659_s30  ;;  %s4665_s30 = smov 65  }
 0x3c3   : > { %v1928_v13 = vpop.permute.xlu0 %1927 }
 0x3c5   : > { %2027 = vrot.lane.b32.xlu1 %v3868_v2, %s4660_s25  ;;  %s4667_s25 = smov 120  }
 0x3c7   : > { %v2128_v19 = vpop.permute.xlu0 %2127 }
 0x3c9   : > { %2227 = vrot.lane.b32.xlu1 %v3878_v3, %s4661_s27 }
 0x42b   : > { %v1437_v0 = vpop.permute.xlu1 %1436 }
 0x42c   : > { %v1438_v10 = vsel %vm1432_vm10, %v1437_v0, %v5087_v56 }
 0x42d   : > { %v1460_v11 = vmul.f32 %v1458_v5, %v1438_v10  ;;  %v1644_v15 = vmul.f32 %v1642_v6, %v1438_v10  ;;  %v1930_v18 = vmul.f32 %v1928_v13, %v1438_v10  ;;  %v2130_v22 = vmul.f32 %v2128_v19, %v1438_v10 }
 0x42f   : > { %v1446_v12 = vpop.permute.xlu1 %1445  ;;  %1465 = vrot.lane.b32.xlu0 %v1460_v11, %s4662_s20 }
 0x430   : > { %v1448_v14 = vmul.f32 %v1446_v12, %v1438_v10 }
 0x432   : > { %1551 = vrot.lane.b32.xlu1 %v1448_v14, %s4663_s0 }
 0x433   : > { %v1742_v16 = vpop.permute.xlu1 %1741  ;;  %1649 = vrot.lane.b32.xlu0 %v1644_v15, %s4664_s21 }
 0x434   : > { %v1744_v17 = vmul.f32 %v1742_v16, %v1438_v10 }
 0x436   : > { %1749 = vrot.lane.b32.xlu1 %v1744_v17, %s4665_s30 }
 0x437   : > { %v2028_v20 = vpop.permute.xlu1 %2027  ;;  %1935 = vrot.lane.b32.xlu0 %v1930_v18, %s5497_s26 }
 0x438   : > { %v2030_v21 = vmul.f32 %v2028_v20, %v1438_v10 }
 0x43a   : > { %2035 = vrot.lane.b32.xlu1 %v2030_v21, %s4666_s28  ;;  %s5439_s28 = scalar_lea.hbm %s5484_s10, %s3899_s12 }
 0x43b   : > { %v2228_v23 = vpop.permute.xlu1 %2227  ;;  %2135 = vrot.lane.b32.xlu0 %v2130_v22, %s4667_s25 }
 0x43c   : > { %v2230_v24 = vmul.f32 %v2228_v23, %v1438_v10 }
 0x43e   : > { %2235 = vrot.lane.b32.xlu1 %v2230_v24, %s4668_s29  ;;  %s4579_s29 = sshll.u32 %s4670_s17, 4  ;;  %s4580_s29 = int_to_ptr.vmem [resolvable:$false] %s4579_s29 }
 0x43f   : > { %2325 = vperm.xlu0 %4536, %v2321_v25  }
 0x442   : > { %2330 = vperm.xlu1 %4547, %v2322_v27  }
 0x4a1   : > { %v1466_v28 = vpop.permute.xlu0 %1465 }
 0x4a2   : > { %4109 = vmatprep.subr.mxu0 %v1466_v28 }
 0x4a3   : > { %4110 = vmatpush3.msra.mxu0 %v1466_v28 }
 0x4a4   : > { %v1552_v9 = vpop.permute.xlu1 %1551  ;;  %4112 = vmatmul.mubr.msk.f32.vlgmr.msra.gmra.mxu0 %vm1468_vm11, %v3844_v29 }
 0x4a5   : > { %4114 = vmatprep.subr.mxu0 %v1552_v9  ;;  %v1650_v30 = vpop.permute.xlu0 %1649  ;;  %4116 = vmatprep.mubr.msk.f32.mxu0 %vm1468_vm11, %v1449_v8 }
 0x4a6   : > { %4115 = vmatpush3.msra.mxu0 %v1552_v9 }
 0x4a7   : > { %4119 = vmatprep.subr.mxu0 %v1650_v30 }
 0x4a8   : > { %v1750_v33 = vpop.permute.xlu1 %1749  ;;  %4117 = vmatmul.mubr.msk.f32.vlgmr.msra.gmra.mxu0 %vm1468_vm11, %v1450_v31 }
 0x4a9   : > { %4120 = vmatpush3.msra.mxu0 %v1650_v30  ;;  %4121 = vmatprep.mubr.msk.f32.mxu0 %vm1468_vm11, %v3850_v32  ;;  %v1936_v41 = vpop.permute.xlu0 %1935 }
 0x4aa   : > { %4124 = vmatprep.subr.mxu0 %v1750_v33 }
 0x4ac   : > { %v2036_v36 = vpop.permute.xlu1 %2035  ;;  %4122 = vmatmul.mubr.msk.f32.vlgmr.msra.gmra.mxu0 %vm1468_vm11, %v3851_v34 }
 0x4ad   : > { %4125 = vmatpush3.msra.mxu0 %v1750_v33  ;;  %4126 = vmatprep.mubr.msk.f32.mxu0 %vm1468_vm11, %v3855_v35  ;;  %v2136_v46 = vpop.permute.xlu0 %2135 }
 0x4ae   : > { %4129 = vmatprep.subr.mxu0 %v5087_v56 }
 0x4b0   : > { %v2236_v38 = vpop.permute.xlu1 %2235  ;;  %4127 = vmatmul.mubr.msk.f32.vlgmr.msra.gmra.mxu0 %vm1468_vm11, %v3856_v37 }
 0x4b1   : > { %4130 = vmatpush3.msra.mxu0 %v5087_v56  ;;  %4149 = vmatprep.subr.mxu1 %v2236_v38 }
 0x4b2   : > { %4134 = vmatprep.subr.mxu0 %v1936_v41  ;;  %4150 = vmatpush3.msra.mxu1 %v2236_v38 }
 0x4b3   : > { %4131 = vmatprep.mubr.msk.f32.mxu0 %vm1468_vm11, %v3859_v39  ;;  %4152 = vmatmul.mubr.msk.f32.vlgmr.msra.gmra.mxu1 %vm1468_vm11, %v3880_v40  ;;  %v2389_v39 = vld [vmem:[#allocation2 + $0x38] sm:$0xff]  ;;  %v2388_v40 = vld [vmem:[#allocation2 + $0x30] sm:$0xff] }
 0x4b4   : > { %4132 = vmatmul.mubr.msk.f32.vlgmr.msra.gmra.mxu0 %vm1468_vm11, %v3860_v42  ;;  %4173 = vmatprep.subr.mxu1 %v4644_v1  ;;  %v2472_v42 = vld [vmem:[#allocation2 + $0x70] sm:$0xff] }
 0x4b5   : > { %4135 = vmatpush3.msra.mxu0 %v1936_v41  ;;  %4136 = vmatprep.mubr.msk.f32.mxu0 %vm1468_vm11, %v3864_v43  ;;  %v2473_v41 = vld [vmem:[#allocation2 + $0x78] sm:$0xff]  ;;  %v2387_v43 = vld [vmem:[#allocation2 + $0x28] sm:$0xff] }
 0x4b6   : > { %4139 = vmatprep.subr.mxu0 %v2036_v36  ;;  %4174 = vmatpush3.msra.mxu1 %v2473_v41  ;;  %v2887_v41 = vld [vmem:[#allocation2 + $0x1b0] sm:$0xff] }
 0x4b7   : > { %4175 = vmatprep.subr.mxu1 %v4644_v1  ;;  %4189 = vmatprep.mubr.msk.f32.mxu1 %vm4669_vm12, %v4644_v1 }
 0x4b8   : > { %4137 = vmatmul.mubr.msk.f32.vlgmr.msra.gmra.mxu0 %vm1468_vm11, %v3865_v44  ;;  %v2471_v44 = vld [vmem:[#allocation2 + $0x68] sm:$0xff]  ;;  %4176 = vmatpush3.msra.mxu1 %v2472_v42  ;;  %v2971_v42 = vld [vmem:[#allocation2 + $0x1f8] sm:$0xff] }
 0x4b9   : > { %4140 = vmatpush3.msra.mxu0 %v2036_v36  ;;  %4141 = vmatprep.mubr.msk.f32.mxu0 %vm1468_vm11, %v3869_v45  ;;  %v2386_v45 = vld [vmem:[#allocation2 + $0x20] sm:$0xff] }
 0x4ba   : > { %4144 = vmatprep.subr.mxu0 %v2136_v46  ;;  %v2326_v23 = vpop.permute.xlu0 %2325  ;;  %4177 = vmatprep.subr.mxu1 %v4644_v1 }
 0x4bb   : > { %4178 = vmatpush3.msra.mxu1 %v2471_v44  ;;  %v2970_v44 = vld [vmem:[#allocation2 + $0x1f0] sm:$0xff] }
 0x4bc   : > { %4142 = vmatmul.mubr.msk.f32.vlgmr.msra.gmra.mxu0 %vm1468_vm11, %v3870_v47  ;;  %4179 = vmatprep.subr.mxu1 %v4644_v1 }
 0x4bd   : > { %4145 = vmatpush3.msra.mxu0 %v2136_v46  ;;  %4146 = vmatprep.mubr.msk.f32.mxu0 %vm1468_vm11, %v3874_v48  ;;  %v2331_v24 = vpop.permute.xlu1 %2330  ;;  %v2470_v46 = vld [vmem:[#allocation2 + $0x60] sm:$0xff]  ;;  %v2385_v48 = vld [vmem:[#allocation2 + $0x18] sm:$0xff] }
 0x4be   : > { %4154 = vmatprep.subr.mxu0 %v4644_v1  ;;  %4180 = vmatpush3.msra.mxu1 %v2470_v46  ;;  %v2969_v46 = vld [vmem:[#allocation2 + $0x1e8] sm:$0xff] }
 0x4bf   : > { %4181 = vmatprep.subr.mxu1 %v4644_v1 }
 0x4c0   : > { %4147 = vmatmul.mubr.msk.f32.vlgmr.msra.gmra.mxu0 %vm1468_vm11, %v3875_v49 }
 0x4c1   : > { %4155 = vmatpush3.msra.mxu0 %v2389_v39  ;;  %4170 = vmatprep.mubr.msk.f32.mxu0 %vm4669_vm12, %v4644_v1  ;;  %v2888_v39 = vld [vmem:[#allocation2 + $0x1b8] sm:$0xff] }
 0x4c2   : > { %4156 = vmatprep.subr.mxu0 %v4644_v1 }
 0x4c3   : > { %4157 = vmatpush3.msra.mxu0 %v2388_v40 }
 0x4c4   : > { %4158 = vmatprep.subr.mxu0 %v4644_v1 }
 0x4c5   : > { %4159 = vmatpush3.msra.mxu0 %v2387_v43  ;;  %v2886_v43 = vld [vmem:[#allocation2 + $0x1a8] sm:$0xff] }
 0x4c6   : > { %4160 = vmatprep.subr.mxu0 %v4644_v1 }
 0x4c7   : > { %4161 = vmatpush3.msra.mxu0 %v2386_v45  ;;  %v2885_v45 = vld [vmem:[#allocation2 + $0x1a0] sm:$0xff] }
 0x4c8   : > { %4162 = vmatprep.subr.mxu0 %v4644_v1 }
 0x4c9   : > { %4163 = vmatpush3.msra.mxu0 %v2385_v48  ;;  %v2968_v48 = vld [vmem:[#allocation2 + $0x1e0] sm:$0xff] }
 0x4ca   : > { %4164 = vmatprep.subr.mxu0 %v4644_v1 }
 0x564   : > { %v4113_v50 = vpop.f32.mrf.mxu0 }
 0x566   : > { %v1541_v51 = vpop.f32.mrf.mxu0 }
 0x568   : > { %v4118_v52 = vpop.f32.mrf.mxu0 }
 0x569   : > { %v1632_v58 = vadd.f32 %v4118_v52, %v4113_v50  ;;  %v2469_v50 = vld [vmem:[#allocation2 + $0x58] sm:$0xff] }
 0x56a   : > { %v1626_v53 = vpop.f32.mrf.mxu0  ;;  %4182 = vmatpush3.msra.mxu1 %v2469_v50  ;;  %v2967_v50 = vld [vmem:[#allocation2 + $0x1d8] sm:$0xff] }
 0x56b   : > { %v1627_v60 = vadd.f32 %v1626_v53, %v1541_v51  ;;  %v2384_v51 = vld [vmem:[#allocation2 + $0x10] sm:$0xff]  ;;  %v2383_v53 = vld [vmem:[#allocation2 + $0x8] sm:$0xff]  ;;  %4183 = vmatprep.subr.mxu1 %v4644_v1 }
 0x56c   : > { %v4123_v54 = vpop.f32.mrf.mxu0  ;;  %4165 = vmatpush3.msra.mxu0 %v2384_v51  ;;  %v2882_v51 = vld [vmem:[#allocation2 + $0x188] sm:$0xff] }
 0x56d   : > { %v1734_v61 = vadd.f32 %v4123_v54, %v1632_v58  ;;  %v2468_v54 = vld [vmem:[#allocation2 + $0x50] sm:$0xff]  ;;  %4166 = vmatprep.subr.mxu0 %v4644_v1 }
 0x56e   : > { %v1724_v55 = vpop.f32.mrf.mxu0  ;;  %4167 = vmatpush3.msra.mxu0 %v2383_v53  ;;  %4184 = vmatpush3.msra.mxu1 %v2468_v54  ;;  %v2881_v53 = vld [vmem:[#allocation2 + $0x180] sm:$0xff]  ;;  %v2965_v54 = vld [vmem:[#allocation2 + $0x1c8] sm:$0xff] }
 0x56f   : > { %v1733_v63 = vadd.f32 %v1724_v55, %v1627_v60  ;;  %4168 = vmatprep.subr.mxu0 %v4644_v1  ;;  %4185 = vmatprep.subr.mxu1 %v4644_v1 }
 0x570   : > { %v4128_v56 = vpop.f32.mrf.mxu0 }
 0x571   : > { %v1834_v2 = vadd.f32 %v4128_v56, %v1734_v61  ;;  %v2382_v56 = vld [vmem:[#allocation2] sm:$0xff] }
 0x572   : > { %v1824_v57 = vpop.f32.mrf.mxu0  ;;  %4169 = vmatpush3.msra.mxu0 %v2382_v56  ;;  %v2964_v56 = vld [vmem:[#allocation2 + $0x1c0] sm:$0xff] }
 0x573   : > { %v1833_v4 = vadd.f32 %v1824_v57, %v1733_v63  ;;  %v4153_v15 = vpop.f32.mrf.mxu1  ;;  %v2467_v57 = vld [vmem:[#allocation2 + $0x48] sm:$0xff]  ;;  %4192 = vmatprep.subr.mxu0 %v4644_v1 }
 0x574   : > { %v4133_v7 = vpop.f32.mrf.mxu0  ;;  %4186 = vmatpush3.msra.mxu1 %v2467_v57  ;;  %v3054_v57 = vld [vmem:[#allocation2 + $0x238] sm:$0xff] }
 0x575   : > { %v1920_v5 = vadd.f32 %v4133_v7, %v1834_v2  ;;  %v2310_v20 = vpop.f32.mrf.mxu1  ;;  %4187 = vmatprep.subr.mxu1 %v4644_v1  ;;  %v2466_v7 = vld [vmem:[#allocation2 + $0x40] sm:$0xff]  ;;  %v2556_v2 = vld [vmem:[#allocation2 + $0xb8] sm:$0xff] }
 0x576   : > { %v1910_v59 = vpop.f32.mrf.mxu0  ;;  %4188 = vmatpush3.msra.mxu1 %v2466_v7 }
 0x577   : > { %v1919_v0 = vadd.f32 %v1910_v59, %v1833_v4  ;;  %4211 = vmatprep.subr.mxu1 %v4644_v1  ;;  %v2555_v4 = vld [vmem:[#allocation2 + $0xb0] sm:$0xff] }
 0x578   : > { %v4138_v62 = vpop.f32.mrf.mxu0 }
 0x579   : > { %v2020_v10 = vadd.f32 %v4138_v62, %v1920_v5  ;;  %v2639_v5 = vld [vmem:[#allocation2 + $0xf8] sm:$0xff] }
 0x57a   : > { %v2010_v3 = vpop.f32.mrf.mxu0 }
 0x57b   : > { %v2019_v12 = vadd.f32 %v2010_v3, %v1919_v0  ;;  %v2638_v0 = vld [vmem:[#allocation2 + $0xf0] sm:$0xff] }
 0x57c   : > { %v4143_v6 = vpop.f32.mrf.mxu0 }
 0x57d   : > { %v2120_v13 = vadd.f32 %v4143_v6, %v2020_v10  ;;  %v2554_v6 = vld [vmem:[#allocation2 + $0xa8] sm:$0xff]  ;;  %v2553_v10 = vld [vmem:[#allocation2 + $0xa0] sm:$0xff] }
 0x57e   : > { %v2110_v11 = vpop.f32.mrf.mxu0 }
 0x57f   : > { %v2119_v16 = vadd.f32 %v2110_v11, %v2019_v12  ;;  %v2637_v11 = vld [vmem:[#allocation2 + $0xe8] sm:$0xff]  ;;  %v2552_v12 = vld [vmem:[#allocation2 + $0x98] sm:$0xff] }
 0x580   : > { %v4148_v14 = vpop.f32.mrf.mxu0 }
 0x581   : > { %v2220_v17 = vadd.f32 %v4148_v14, %v2120_v13  ;;  %v2636_v13 = vld [vmem:[#allocation2 + $0xe0] sm:$0xff]  ;;  %v2551_v14 = vld [vmem:[#allocation2 + $0x90] sm:$0xff] }
 0x582   : > { %v2210_v18 = vpop.f32.mrf.mxu0 }
 0x583   : > { %v2219_v19 = vadd.f32 %v2210_v18, %v2119_v16  ;;  %v2320_v21 = vadd.f32 %v4153_v15, %v2220_v17  ;;  %v2635_v15 = vld [vmem:[#allocation2 + $0xd8] sm:$0xff]  ;;  %v2550_v16 = vld [vmem:[#allocation2 + $0x88] sm:$0xff]  ;;  %v2634_v17 = vld [vmem:[#allocation2 + $0xd0] sm:$0xff] }
 0x584   : > { %v2549_v18 = vld [vmem:[#allocation2 + $0x80] sm:$0xff] }
 0x585   : > { %v2319_v22 = vadd.f32 %v2310_v20, %v2219_v19  ;;  %v2334_v27 = vadd.f32 %v2331_v24, %v2320_v21  ;;  %v2633_v19 = vld [vmem:[#allocation2 + $0xc8] sm:$0xff]  ;;  %v2632_v21 = vld [vmem:[#allocation2 + $0xc0] sm:$0xff]  ;;  %v2721_v24 = vld [vmem:[#allocation2 + $0x130] sm:$0xff] }
 0x587   : > { %v2333_v25 = vadd.f32 %v2326_v23, %v2319_v22  ;;  %v2336_v28 = vmax.f32 %v2334_v27, 0.0  ;;  %v2722_v22 = vld [vmem:[#allocation2 + $0x138] sm:$0xff]  ;;  %v2804_v27 = vld [vmem:[#allocation2 + $0x170] sm:$0xff] }
 0x589   : > { %v2335_v26 = vmax.f32 %v2333_v25, 0.0  ;;  %v2805_v25 = vld [vmem:[#allocation2 + $0x178] sm:$0xff] }
 0x58b   : > { %2337 = vrot.lane.b32.xlu0 %v2335_v26, %s5496_s11 }
 0x58f   : > { %2340 = vrot.lane.b32.xlu0 %v2336_v28, %s5496_s11 }
 0x5fd   : > { %v2338_v29 = vpop.permute.xlu0 %2337 }
 0x5fe   : > { %v2339_v8 = vsel %vm1432_vm10, %v2338_v29, %v2335_v26  ;;  %v2803_v29 = vld [vmem:[#allocation2 + $0x168] sm:$0xff] }
 0x5ff   : > { %2343 = vrot.lane.b32.xlu1 %v2339_v8, %s5496_s11  ;;  %v2718_v8 = vld [vmem:[#allocation2 + $0x118] sm:$0xff] }
 0x601   : > { %v2341_v9 = vpop.permute.xlu0 %2340 }
 0x602   : > { %v2342_v30 = vsel %vm1432_vm10, %v2341_v9, %v2336_v28  ;;  %v2802_v9 = vld [vmem:[#allocation2 + $0x160] sm:$0xff] }
 0x603   : > { %2345 = vrot.lane.b32.xlu0 %v2342_v30, %s5496_s11  ;;  %v2717_v30 = vld [vmem:[#allocation2 + $0x110] sm:$0xff] }
 0x671   : > { %v2344_v31 = vpop.permute.xlu1 %2343 }
 0x672   : > { %v2347_v32 = vsel %vm1432_vm10, %v2344_v31, %v2335_v26  ;;  %v2801_v31 = vld [vmem:[#allocation2 + $0x158] sm:$0xff] }
 0x673   : > { %2351 = vrot.lane.b32.xlu1 %v2347_v32, %s5497_s26  ;;  %v2716_v32 = vld [vmem:[#allocation2 + $0x108] sm:$0xff] }
 0x675   : > { %v2346_v33 = vpop.permute.xlu0 %2345 }
 0x676   : > { %v2348_v34 = vsel %vm1432_vm10, %v2346_v33, %v2336_v28  ;;  %v2800_v33 = vld [vmem:[#allocation2 + $0x150] sm:$0xff] }
 0x677   : > { %2353 = vrot.lane.b32.xlu0 %v2348_v34, %s5497_s26  ;;  %v2715_v34 = vld [vmem:[#allocation2 + $0x100] sm:$0xff] }
 0x6e5   : > { %v2352_v35 = vpop.permute.xlu1 %2351 }
 0x6e6   : > { %v5215_v36 = vmax.f32 %v2335_v26, %v2352_v35  ;;  %v2720_v26 = vld [vmem:[#allocation2 + $0x128] sm:$0xff] }
 0x6e7   : > { %v2799_v35 = vld [vmem:[#allocation2 + $0x148] sm:$0xff] }
 0x6e8   : > { %2359 = vrot.lane.b32.xlu1 %v5215_v36, %s5496_s11 }
 0x6e9   : > { %v2354_v37 = vpop.permute.xlu0 %2353 }
 0x6ea   : > { %v5219_v38 = vmax.f32 %v2336_v28, %v2354_v37  ;;  %v2719_v28 = vld [vmem:[#allocation2 + $0x120] sm:$0xff] }
 0x6eb   : > { %v2798_v37 = vld [vmem:[#allocation2 + $0x140] sm:$0xff] }
 0x6ec   : > { %2362 = vrot.lane.b32.xlu0 %v5219_v38, %s5496_s11 }
 0x75a   : > { %v2360_v47 = vpop.permute.xlu1 %2359 }
 0x75b   : > { %v2361_v49 = vsel %vm1432_vm10, %v2360_v47, %v5215_v36  ;;  %v2884_v47 = vld [vmem:[#allocation2 + $0x198] sm:$0xff] }
 0x75c   : > { %2365 = vrot.lane.b32.xlu1 %v2361_v49, %s5496_s11  ;;  %v2883_v49 = vld [vmem:[#allocation2 + $0x190] sm:$0xff] }
 0x75e   : > { %v2363_v52 = vpop.permute.xlu0 %2362 }
 0x75f   : > { %v2364_v55 = vsel %vm1432_vm10, %v2363_v52, %v5219_v38  ;;  %v2966_v52 = vld [vmem:[#allocation2 + $0x1d0] sm:$0xff] }
 0x760   : > { %2367 = vrot.lane.b32.xlu0 %v2364_v55, %s5496_s11  ;;  %s4581_s11 = scalar_lea.vmem %s4580_s29, 32 }
 0x7ce   : > { %v2366_v58 = vpop.permute.xlu1 %2365 }
 0x7cf   : > { %v2369_v59 = vsel %vm1432_vm10, %v2366_v58, %v5215_v36  ;;  %v3053_v58 = vld [vmem:[#allocation2 + $0x230] sm:$0xff] }
 0x7d0   : > { %2373 = vrot.lane.b32.xlu1 %v2369_v59, %s4667_s25  ;;  %v3137_v59 = vld [vmem:[#allocation2 + $0x278] sm:$0xff] }
 0x7d2   : > { %v2368_v60 = vpop.permute.xlu0 %2367 }
 0x7d3   : > { %v2370_v61 = vsel %vm1432_vm10, %v2368_v60, %v5219_v38  ;;  %v3052_v60 = vld [vmem:[#allocation2 + $0x228] sm:$0xff] }
 0x7d4   : > { %2375 = vrot.lane.b32.xlu1 %v2370_v61, %s4667_s25  ;;  %v3136_v61 = vld [vmem:[#allocation2 + $0x270] sm:$0xff]  ;;  %s365_s25 = sand.u32 1, %s4631_s14  }
 0x7d5   : > { %s366_s20 = scalar_lea.vmem [#allocation5], %s365_s25  ;;  %s3712_s18 = scalar_lea.sflag [#allocation4], %s365_s25 }
 0x7d6   : > { %s3724_s0 = sshll.u32 %s366_s20, 4  ;;  %s3725_s0 = int_to_ptr.vmem [resolvable:$true] %s3724_s0 }
 0x7d7   : > { %s4575_s27 = scalar_lea.vmem %s3725_s0, 16  ;;  %p4582_p11 = scmp.lt.s32.totalorder %s3725_s0, %s4580_s29 }
 0x7d8   : > { %p4576_p6 = scmp.ne.s32.totalorder %s3725_s0, %s4575_s27  ;;  %p4583_p12 = scmp.lt.s32.totalorder %s4581_s11, %s4575_s27 }
 0x7da   : > { %p4577_p9 = pnand %p4576_p6, %p4764_p5  ;;  %p4584_p13 = por %p4583_p12, %p4582_p11 }
 0x7dc   : > { %p4578_p10 = pneg %p4577_p9 }
 0x7de   : > { %p4585_p0 = pnand %p4584_p13, %p4578_p10 }
 0x842   : > { %v2374_v62 = vpop.permute.xlu1 %2373 }
 0x843   : > { %v5256_v63 = vmax.f32 %v5215_v36, %v2374_v62  ;;  %v3051_v62 = vld [vmem:[#allocation2 + $0x220] sm:$0xff] }
 0x845   : > { %4171 = vmatmul.mubr.msk.f32.vlgmr.msra.gmra.mxu0 %vm2390_vm13, %v5256_v63  ;;  %v2474_v3 = vrot.slane %v5256_v63, 1  ;;  %v2557_v20 = vrot.slane %v5256_v63, 2  ;;  %v2640_v23 = vrot.slane %v5256_v63, 3  ;;  %v2723_v36 = vrot.slane %v5256_v63, 4 }
 0x846   : > { %4193 = vmatpush3.msra.mxu0 %v2556_v2  ;;  %4208 = vmatprep.mubr.msk.f32.mxu0 %vm4669_vm12, %v4644_v1  ;;  %v2806_v40 = vrot.slane %v5256_v63, 5  ;;  %v2889_v55 = vrot.slane %v5256_v63, 6  ;;  %v2972_v7 = vrot.slane %v5256_v63, 7  ;;  %v3135_v63 = vld [vmem:[#allocation2 + $0x268] sm:$0xff]  ;;  %v3050_v2 = vld [vmem:[#allocation2 + $0x218] sm:$0xff] }
 0x847   : > { %4194 = vmatprep.subr.mxu0 %v4644_v1  ;;  %4190 = vmatmul.mubr.msk.f32.vlgmr.msra.gmra.mxu1 %vm2390_vm13, %v2474_v3  ;;  %v3134_v3 = vld [vmem:[#allocation2 + $0x260] sm:$0xff] }
 0x848   : > { %4195 = vmatpush3.msra.mxu0 %v2555_v4  ;;  %4212 = vmatpush3.msra.mxu1 %v2639_v5  ;;  %v3049_v4 = vld [vmem:[#allocation2 + $0x210] sm:$0xff]  ;;  %v3133_v5 = vld [vmem:[#allocation2 + $0x258] sm:$0xff] }
 0x849   : > { %4196 = vmatprep.subr.mxu0 %v4644_v1  ;;  %4213 = vmatprep.subr.mxu1 %v4644_v1 }
 0x84a   : > { %4197 = vmatpush3.msra.mxu0 %v2554_v6  ;;  %4214 = vmatpush3.msra.mxu1 %v2638_v0  ;;  %v3048_v6 = vld [vmem:[#allocation2 + $0x208] sm:$0xff]  ;;  %v2376_v0 = vpop.permute.xlu1 %2375 }
 0x84b   : > { %4198 = vmatprep.subr.mxu0 %v4644_v1  ;;  %4215 = vmatprep.subr.mxu1 %v4644_v1 }
 0x84c   : > { %4199 = vmatpush3.msra.mxu0 %v2553_v10  ;;  %4216 = vmatpush3.msra.mxu1 %v2637_v11  ;;  %v3132_v10 = vld [vmem:[#allocation2 + $0x250] sm:$0xff]  ;;  %v3047_v11 = vld [vmem:[#allocation2 + $0x200] sm:$0xff] }
 0x84d   : > { %4200 = vmatprep.subr.mxu0 %v4644_v1  ;;  %4217 = vmatprep.subr.mxu1 %v4644_v1 }
 0x84e   : > { %4201 = vmatpush3.msra.mxu0 %v2552_v12  ;;  %4218 = vmatpush3.msra.mxu1 %v2636_v13  ;;  %v3131_v12 = vld [vmem:[#allocation2 + $0x248] sm:$0xff]  ;;  %v5346_v13 = vmax.f32 %v5219_v38, %v2376_v0 }
 0x84f   : > { %4202 = vmatprep.subr.mxu0 %v4644_v1  ;;  %4219 = vmatprep.subr.mxu1 %v4644_v1 }
 0x850   : > { %4203 = vmatpush3.msra.mxu0 %v2551_v14  ;;  %4220 = vmatpush3.msra.mxu1 %v2635_v15  ;;  %v3130_v14 = vld [vmem:[#allocation2 + $0x240] sm:$0xff]  ;;  %v3220_v15 = vld [vmem:[#allocation2 + $0x2b8] sm:$0xff]  ;;  %v3138_v38 = vrot.slane %v5346_v13, 1 }
 0x851   : > { %4204 = vmatprep.subr.mxu0 %v4644_v1  ;;  %4221 = vmatprep.subr.mxu1 %v4644_v1 }
 0x852   : > { %4205 = vmatpush3.msra.mxu0 %v2550_v16  ;;  %4222 = vmatpush3.msra.mxu1 %v2634_v17  ;;  %v3219_v16 = vld [vmem:[#allocation2 + $0x2b0] sm:$0xff]  ;;  %v3303_v17 = vld [vmem:[#allocation2 + $0x2f8] sm:$0xff] }
 0x853   : > { %4206 = vmatprep.subr.mxu0 %v4644_v1  ;;  %4223 = vmatprep.subr.mxu1 %v4644_v1 }
 0x854   : > { %4207 = vmatpush3.msra.mxu0 %v2549_v18  ;;  %4224 = vmatpush3.msra.mxu1 %v2633_v19  ;;  %v3218_v18 = vld [vmem:[#allocation2 + $0x2a8] sm:$0xff]  ;;  %v3302_v19 = vld [vmem:[#allocation2 + $0x2f0] sm:$0xff] }
 0x855   : > { %4209 = vmatmul.mubr.msk.f32.vlgmr.msra.gmra.mxu0 %vm2390_vm13, %v2557_v20  ;;  %4225 = vmatprep.subr.mxu1 %v4644_v1  ;;  %v3217_v20 = vld [vmem:[#allocation2 + $0x2a0] sm:$0xff] }
 0x856   : > { %4230 = vmatprep.subr.mxu0 %v4644_v1  ;;  %4226 = vmatpush3.msra.mxu1 %v2632_v21  ;;  %v3301_v21 = vld [vmem:[#allocation2 + $0x2e8] sm:$0xff] }
 0x857   : > { %4227 = vmatprep.mubr.msk.f32.mxu1 %vm4669_vm12, %v4644_v1  ;;  %4231 = vmatpush3.msra.mxu0 %v2722_v22  ;;  %v3216_v22 = vld [vmem:[#allocation2 + $0x298] sm:$0xff] }
 0x858   : > { %4228 = vmatmul.mubr.msk.f32.vlgmr.msra.gmra.mxu1 %vm2390_vm13, %v2640_v23  ;;  %4232 = vmatprep.subr.mxu0 %v4644_v1  ;;  %v3300_v23 = vld [vmem:[#allocation2 + $0x2e0] sm:$0xff] }
 0x859   : > { %4249 = vmatprep.subr.mxu1 %v4644_v1  ;;  %4233 = vmatpush3.msra.mxu0 %v2721_v24  ;;  %v3215_v24 = vld [vmem:[#allocation2 + $0x290] sm:$0xff] }
 0x85a   : > { %4250 = vmatpush3.msra.mxu1 %v2805_v25  ;;  %4234 = vmatprep.subr.mxu0 %v4644_v1  ;;  %v3299_v25 = vld [vmem:[#allocation2 + $0x2d8] sm:$0xff] }
 0x85b   : > { %4251 = vmatprep.subr.mxu1 %v4644_v1  ;;  %4235 = vmatpush3.msra.mxu0 %v2720_v26  ;;  %v3214_v26 = vld [vmem:[#allocation2 + $0x288] sm:$0xff] }
 0x85c   : > { %4252 = vmatpush3.msra.mxu1 %v2804_v27  ;;  %4236 = vmatprep.subr.mxu0 %v4644_v1  ;;  %v3298_v27 = vld [vmem:[#allocation2 + $0x2d0] sm:$0xff] }
 0x85d   : > { %4253 = vmatprep.subr.mxu1 %v4644_v1  ;;  %4237 = vmatpush3.msra.mxu0 %v2719_v28  ;;  %v3213_v28 = vld [vmem:[#allocation2 + $0x280] sm:$0xff] }
 0x85e   : > { %4254 = vmatpush3.msra.mxu1 %v2803_v29  ;;  %4238 = vmatprep.subr.mxu0 %v4644_v1  ;;  %v3297_v29 = vld [vmem:[#allocation2 + $0x2c8] sm:$0xff] }
 0x85f   : > { %4255 = vmatprep.subr.mxu1 %v4644_v1  ;;  %4239 = vmatpush3.msra.mxu0 %v2718_v8  ;;  %v3221_v8 = vrot.slane %v5346_v13, 2 }
 0x860   : > { %4256 = vmatpush3.msra.mxu1 %v2802_v9  ;;  %4240 = vmatprep.subr.mxu0 %v4644_v1  ;;  %v3296_v9 = vld [vmem:[#allocation2 + $0x2c0] sm:$0xff] }
 0x861   : > { %4257 = vmatprep.subr.mxu1 %v4644_v1  ;;  %4241 = vmatpush3.msra.mxu0 %v2717_v30  ;;  %v3386_v30 = vld [vmem:[#allocation2 + $0x338] sm:$0xff] }
 0x862   : > { %4258 = vmatpush3.msra.mxu1 %v2801_v31  ;;  %4242 = vmatprep.subr.mxu0 %v4644_v1  ;;  %v3304_v31 = vrot.slane %v5346_v13, 3 }
 0x863   : > { %4259 = vmatprep.subr.mxu1 %v4644_v1  ;;  %4243 = vmatpush3.msra.mxu0 %v2716_v32  ;;  %v3385_v32 = vld [vmem:[#allocation2 + $0x330] sm:$0xff] }
 0x864   : > { %4260 = vmatpush3.msra.mxu1 %v2800_v33  ;;  %4244 = vmatprep.subr.mxu0 %v4644_v1  ;;  %v3469_v33 = vld [vmem:[#allocation2 + $0x378] sm:$0xff] }
 0x865   : > { %4261 = vmatprep.subr.mxu1 %v4644_v1  ;;  %4245 = vmatpush3.msra.mxu0 %v2715_v34  ;;  %v3384_v34 = vld [vmem:[#allocation2 + $0x328] sm:$0xff] }
 0x866   : > { %4246 = vmatprep.mubr.msk.f32.mxu0 %vm4669_vm12, %v4644_v1  ;;  %4262 = vmatpush3.msra.mxu1 %v2799_v35  ;;  %v3468_v35 = vld [vmem:[#allocation2 + $0x370] sm:$0xff] }
 0x867   : > { %4247 = vmatmul.mubr.msk.f32.vlgmr.msra.gmra.mxu0 %vm2390_vm13, %v2723_v36  ;;  %4263 = vmatprep.subr.mxu1 %v4644_v1  ;;  %v3383_v36 = vld [vmem:[#allocation2 + $0x320] sm:$0xff] }
 0x868   : > { %4268 = vmatprep.subr.mxu0 %v4644_v1  ;;  %4264 = vmatpush3.msra.mxu1 %v2798_v37  ;;  %v3467_v37 = vld [vmem:[#allocation2 + $0x368] sm:$0xff] }
 0x869   : > { %4265 = vmatprep.mubr.msk.f32.mxu1 %vm4669_vm12, %v4644_v1  ;;  %4269 = vmatpush3.msra.mxu0 %v2888_v39  ;;  %v3382_v39 = vld [vmem:[#allocation2 + $0x318] sm:$0xff] }
 0x86a   : > { %4266 = vmatmul.mubr.msk.f32.vlgmr.msra.gmra.mxu1 %vm2390_vm13, %v2806_v40  ;;  %4270 = vmatprep.subr.mxu0 %v4644_v1  ;;  %v3466_v40 = vld [vmem:[#allocation2 + $0x360] sm:$0xff] }
 0x86b   : > { %4287 = vmatprep.subr.mxu1 %v4644_v1  ;;  %4271 = vmatpush3.msra.mxu0 %v2887_v41  ;;  %v3381_v41 = vld [vmem:[#allocation2 + $0x310] sm:$0xff] }
 0x86c   : > { %4288 = vmatpush3.msra.mxu1 %v2971_v42  ;;  %4272 = vmatprep.subr.mxu0 %v4644_v1  ;;  %v3465_v42 = vld [vmem:[#allocation2 + $0x358] sm:$0xff] }
 0x86d   : > { %4289 = vmatprep.subr.mxu1 %v4644_v1  ;;  %4273 = vmatpush3.msra.mxu0 %v2886_v43  ;;  %v3380_v43 = vld [vmem:[#allocation2 + $0x308] sm:$0xff] }
 0x86e   : > { %4290 = vmatpush3.msra.mxu1 %v2970_v44  ;;  %4274 = vmatprep.subr.mxu0 %v4644_v1  ;;  %v3464_v44 = vld [vmem:[#allocation2 + $0x350] sm:$0xff] }
 0x86f   : > { %4291 = vmatprep.subr.mxu1 %v4644_v1  ;;  %4275 = vmatpush3.msra.mxu0 %v2885_v45  ;;  %v3379_v45 = vld [vmem:[#allocation2 + $0x300] sm:$0xff] }
 0x870   : > { %4292 = vmatpush3.msra.mxu1 %v2969_v46  ;;  %4276 = vmatprep.subr.mxu0 %v4644_v1  ;;  %v3463_v46 = vld [vmem:[#allocation2 + $0x348] sm:$0xff] }
 0x871   : > { %4293 = vmatprep.subr.mxu1 %v4644_v1  ;;  %4277 = vmatpush3.msra.mxu0 %v2884_v47  ;;  %v3387_v47 = vrot.slane %v5346_v13, 4 }
 0x872   : > { %4294 = vmatpush3.msra.mxu1 %v2968_v48  ;;  %4278 = vmatprep.subr.mxu0 %v4644_v1  ;;  %v3462_v48 = vld [vmem:[#allocation2 + $0x340] sm:$0xff] }
 0x873   : > { %4295 = vmatprep.subr.mxu1 %v4644_v1  ;;  %4279 = vmatpush3.msra.mxu0 %v2883_v49  ;;  %v3552_v49 = vld [vmem:[#allocation2 + $0x3b8] sm:$0xff] }
 0x874   : > { %4296 = vmatpush3.msra.mxu1 %v2967_v50  ;;  %4280 = vmatprep.subr.mxu0 %v4644_v1  ;;  %v3470_v50 = vrot.slane %v5346_v13, 5 }
 0x875   : > { %4297 = vmatprep.subr.mxu1 %v4644_v1  ;;  %4281 = vmatpush3.msra.mxu0 %v2882_v51  ;;  %v3551_v51 = vld [vmem:[#allocation2 + $0x3b0] sm:$0xff] }
 0x876   : > { %4298 = vmatpush3.msra.mxu1 %v2966_v52  ;;  %4282 = vmatprep.subr.mxu0 %v4644_v1  ;;  %v3635_v52 = vld [vmem:[#allocation2 + $0x3f8] sm:$0xff] }
 0x877   : > { %4299 = vmatprep.subr.mxu1 %v4644_v1  ;;  %4283 = vmatpush3.msra.mxu0 %v2881_v53  ;;  %v3550_v53 = vld [vmem:[#allocation2 + $0x3a8] sm:$0xff] }
 0x878   : > { %4284 = vmatprep.mubr.msk.f32.mxu0 %vm4669_vm12, %v4644_v1  ;;  %4300 = vmatpush3.msra.mxu1 %v2965_v54  ;;  %v3634_v54 = vld [vmem:[#allocation2 + $0x3f0] sm:$0xff] }
 0x879   : > { %4285 = vmatmul.mubr.msk.f32.vlgmr.msra.gmra.mxu0 %vm2390_vm13, %v2889_v55  ;;  %4301 = vmatprep.subr.mxu1 %v4644_v1  ;;  %v3549_v55 = vld [vmem:[#allocation2 + $0x3a0] sm:$0xff] }
 0x87a   : > { %4306 = vmatprep.subr.mxu0 %v4644_v1  ;;  %4302 = vmatpush3.msra.mxu1 %v2964_v56  ;;  %v3633_v56 = vld [vmem:[#allocation2 + $0x3e8] sm:$0xff] }
 0x87b   : > { %4303 = vmatprep.mubr.msk.f32.mxu1 %vm4669_vm12, %v4644_v1  ;;  %4307 = vmatpush3.msra.mxu0 %v3054_v57  ;;  %v3548_v57 = vld [vmem:[#allocation2 + $0x398] sm:$0xff] }
 0x87c   : > { %4304 = vmatmul.mubr.msk.f32.vlgmr.msra.gmra.mxu1 %vm2390_vm13, %v2972_v7  ;;  %4308 = vmatprep.subr.mxu0 %v4644_v1  ;;  %v3632_v7 = vld [vmem:[#allocation2 + $0x3e0] sm:$0xff] }
 0x87d   : > { %4325 = vmatprep.subr.mxu1 %v4644_v1  ;;  %4309 = vmatpush3.msra.mxu0 %v3053_v58  ;;  %v3547_v58 = vld [vmem:[#allocation2 + $0x390] sm:$0xff] }
 0x87e   : > { %4326 = vmatpush3.msra.mxu1 %v3137_v59  ;;  %4310 = vmatprep.subr.mxu0 %v4644_v1  ;;  %v3631_v59 = vld [vmem:[#allocation2 + $0x3d8] sm:$0xff] }
 0x87f   : > { %4327 = vmatprep.subr.mxu1 %v4644_v1  ;;  %4311 = vmatpush3.msra.mxu0 %v3052_v60  ;;  %v3546_v60 = vld [vmem:[#allocation2 + $0x388] sm:$0xff] }
 0x880   : > { %4328 = vmatpush3.msra.mxu1 %v3136_v61  ;;  %4312 = vmatprep.subr.mxu0 %v4644_v1  ;;  %v3630_v61 = vld [vmem:[#allocation2 + $0x3d0] sm:$0xff] }
 0x881   : > { %4329 = vmatprep.subr.mxu1 %v4644_v1  ;;  %4313 = vmatpush3.msra.mxu0 %v3051_v62  ;;  %v3545_v62 = vld [vmem:[#allocation2 + $0x380] sm:$0xff] }
 0x882   : > { %4330 = vmatpush3.msra.mxu1 %v3135_v63  ;;  %4314 = vmatprep.subr.mxu0 %v4644_v1  ;;  %v3629_v63 = vld [vmem:[#allocation2 + $0x3c8] sm:$0xff] }
 0x883   : > { %4331 = vmatprep.subr.mxu1 %v4644_v1  ;;  %4315 = vmatpush3.msra.mxu0 %v3050_v2  ;;  %v3553_v2 = vrot.slane %v5346_v13, 6 }
 0x884   : > { %4332 = vmatpush3.msra.mxu1 %v3134_v3  ;;  %4316 = vmatprep.subr.mxu0 %v4644_v1  ;;  %v3628_v3 = vld [vmem:[#allocation2 + $0x3c0] sm:$0xff] }
 0x885   : > { %4333 = vmatprep.subr.mxu1 %v4644_v1  ;;  %4317 = vmatpush3.msra.mxu0 %v3049_v4  ;;  %v3636_v4 = vrot.slane %v5346_v13, 7 }
 0x886   : > { %4334 = vmatpush3.msra.mxu1 %v3133_v5  ;;  %4318 = vmatprep.subr.mxu0 %v4644_v1  ;;  %v2381_v5 = vld [vmem:[%s5480_s6] sm:$0x1] }
 0x887   : > { %4335 = vmatprep.subr.mxu1 %v4644_v1  ;;  %4319 = vmatpush3.msra.mxu0 %v3048_v6 }
 0x888   : > { %4336 = vmatpush3.msra.mxu1 %v3132_v10  ;;  %4320 = vmatprep.subr.mxu0 %v4644_v1 }
 0x889   : > { %4337 = vmatprep.subr.mxu1 %v4644_v1  ;;  %4321 = vmatpush3.msra.mxu0 %v3047_v11 }
 0x88a   : > { %4322 = vmatprep.mubr.msk.f32.mxu0 %vm4669_vm12, %v4644_v1  ;;  %4338 = vmatpush3.msra.mxu1 %v3131_v12 }
 0x88b   : > { %4323 = vmatmul.mubr.msk.f32.vlgmr.msra.gmra.mxu0 %vm2390_vm13, %v5346_v13  ;;  %4339 = vmatprep.subr.mxu1 %v4644_v1 }
 0x88c   : > { %4344 = vmatprep.subr.mxu0 %v4644_v1  ;;  %4340 = vmatpush3.msra.mxu1 %v3130_v14 }
 0x88d   : > { %4341 = vmatprep.mubr.msk.f32.mxu1 %vm4669_vm12, %v4644_v1  ;;  %4345 = vmatpush3.msra.mxu0 %v3220_v15 }
 0x88e   : > { %4342 = vmatmul.mubr.msk.f32.vlgmr.msra.gmra.mxu1 %vm2390_vm13, %v3138_v38  ;;  %4346 = vmatprep.subr.mxu0 %v4644_v1 }
 0x88f   : > { %4363 = vmatprep.subr.mxu1 %v4644_v1  ;;  %4347 = vmatpush3.msra.mxu0 %v3219_v16 }
 0x890   : > { %4364 = vmatpush3.msra.mxu1 %v3303_v17  ;;  %4348 = vmatprep.subr.mxu0 %v4644_v1 }
 0x891   : > { %4365 = vmatprep.subr.mxu1 %v4644_v1  ;;  %4349 = vmatpush3.msra.mxu0 %v3218_v18 }
 0x892   : > { %4366 = vmatpush3.msra.mxu1 %v3302_v19  ;;  %4350 = vmatprep.subr.mxu0 %v4644_v1 }
 0x893   : > { %4367 = vmatprep.subr.mxu1 %v4644_v1  ;;  %4351 = vmatpush3.msra.mxu0 %v3217_v20 }
 0x894   : > { %4368 = vmatpush3.msra.mxu1 %v3301_v21  ;;  %4352 = vmatprep.subr.mxu0 %v4644_v1 }
 0x895   : > { %4369 = vmatprep.subr.mxu1 %v4644_v1  ;;  %4353 = vmatpush3.msra.mxu0 %v3216_v22 }
 0x896   : > { %4370 = vmatpush3.msra.mxu1 %v3300_v23  ;;  %4354 = vmatprep.subr.mxu0 %v4644_v1 }
 0x897   : > { %4371 = vmatprep.subr.mxu1 %v4644_v1  ;;  %4355 = vmatpush3.msra.mxu0 %v3215_v24 }
 0x898   : > { %4372 = vmatpush3.msra.mxu1 %v3299_v25  ;;  %4356 = vmatprep.subr.mxu0 %v4644_v1 }
 0x899   : > { %4373 = vmatprep.subr.mxu1 %v4644_v1  ;;  %4357 = vmatpush3.msra.mxu0 %v3214_v26 }
 0x89a   : > { %4374 = vmatpush3.msra.mxu1 %v3298_v27  ;;  %4358 = vmatprep.subr.mxu0 %v4644_v1 }
 0x89b   : > { %4375 = vmatprep.subr.mxu1 %v4644_v1  ;;  %4359 = vmatpush3.msra.mxu0 %v3213_v28 }
 0x89c   : > { %4360 = vmatprep.mubr.msk.f32.mxu0 %vm4669_vm12, %v4644_v1  ;;  %4376 = vmatpush3.msra.mxu1 %v3297_v29 }
 0x89d   : > { %4361 = vmatmul.mubr.msk.f32.vlgmr.msra.gmra.mxu0 %vm2390_vm13, %v3221_v8  ;;  %4377 = vmatprep.subr.mxu1 %v4644_v1 }
 0x89e   : > { %4382 = vmatprep.subr.mxu0 %v4644_v1  ;;  %4378 = vmatpush3.msra.mxu1 %v3296_v9 }
 0x89f   : > { %4379 = vmatprep.mubr.msk.f32.mxu1 %vm4669_vm12, %v4644_v1  ;;  %4383 = vmatpush3.msra.mxu0 %v3386_v30 }
 0x8a0   : > { %4380 = vmatmul.mubr.msk.f32.vlgmr.msra.gmra.mxu1 %vm2390_vm13, %v3304_v31  ;;  %4384 = vmatprep.subr.mxu0 %v4644_v1 }
 0x8a1   : > { %4401 = vmatprep.subr.mxu1 %v4644_v1  ;;  %4385 = vmatpush3.msra.mxu0 %v3385_v32 }
 0x8a2   : > { %4402 = vmatpush3.msra.mxu1 %v3469_v33  ;;  %4386 = vmatprep.subr.mxu0 %v4644_v1 }
 0x8a3   : > { %4403 = vmatprep.subr.mxu1 %v4644_v1  ;;  %4387 = vmatpush3.msra.mxu0 %v3384_v34 }
 0x8a4   : > { %4404 = vmatpush3.msra.mxu1 %v3468_v35  ;;  %4388 = vmatprep.subr.mxu0 %v4644_v1 }
 0x8a5   : > { %4405 = vmatprep.subr.mxu1 %v4644_v1  ;;  %4389 = vmatpush3.msra.mxu0 %v3383_v36 }
 0x8a6   : > { %4406 = vmatpush3.msra.mxu1 %v3467_v37  ;;  %4390 = vmatprep.subr.mxu0 %v4644_v1 }
 0x8a7   : > { %4407 = vmatprep.subr.mxu1 %v4644_v1  ;;  %4391 = vmatpush3.msra.mxu0 %v3382_v39 }
 0x8a8   : > { %4408 = vmatpush3.msra.mxu1 %v3466_v40  ;;  %4392 = vmatprep.subr.mxu0 %v4644_v1 }
 0x8a9   : > { %4409 = vmatprep.subr.mxu1 %v4644_v1  ;;  %4393 = vmatpush3.msra.mxu0 %v3381_v41 }
 0x8aa   : > { %4410 = vmatpush3.msra.mxu1 %v3465_v42  ;;  %4394 = vmatprep.subr.mxu0 %v4644_v1 }
 0x8ab   : > { %4411 = vmatprep.subr.mxu1 %v4644_v1  ;;  %4395 = vmatpush3.msra.mxu0 %v3380_v43 }
 0x8ac   : > { %4412 = vmatpush3.msra.mxu1 %v3464_v44  ;;  %4396 = vmatprep.subr.mxu0 %v4644_v1 }
 0x8ad   : > { %4413 = vmatprep.subr.mxu1 %v4644_v1  ;;  %4397 = vmatpush3.msra.mxu0 %v3379_v45 }
 0x8ae   : > { %4398 = vmatprep.mubr.msk.f32.mxu0 %vm4669_vm12, %v4644_v1  ;;  %4414 = vmatpush3.msra.mxu1 %v3463_v46 }
 0x8af   : > { %4399 = vmatmul.mubr.msk.f32.vlgmr.msra.gmra.mxu0 %vm2390_vm13, %v3387_v47  ;;  %4415 = vmatprep.subr.mxu1 %v4644_v1 }
 0x8b0   : > { %4420 = vmatprep.subr.mxu0 %v4644_v1  ;;  %4416 = vmatpush3.msra.mxu1 %v3462_v48 }
 0x8b1   : > { %4417 = vmatprep.mubr.msk.f32.mxu1 %vm4669_vm12, %v4644_v1  ;;  %4421 = vmatpush3.msra.mxu0 %v3552_v49 }
 0x8b2   : > { %4418 = vmatmul.mubr.msk.f32.vlgmr.msra.gmra.mxu1 %vm2390_vm13, %v3470_v50  ;;  %4422 = vmatprep.subr.mxu0 %v4644_v1 }
 0x8b3   : > { %4439 = vmatprep.subr.mxu1 %v4644_v1  ;;  %4423 = vmatpush3.msra.mxu0 %v3551_v51 }
 0x8b4   : > { %4440 = vmatpush3.msra.mxu1 %v3635_v52  ;;  %4424 = vmatprep.subr.mxu0 %v4644_v1 }
 0x8b5   : > { %4441 = vmatprep.subr.mxu1 %v4644_v1  ;;  %4425 = vmatpush3.msra.mxu0 %v3550_v53 }
 0x8b6   : > { %4442 = vmatpush3.msra.mxu1 %v3634_v54  ;;  %4426 = vmatprep.subr.mxu0 %v4644_v1 }
 0x8b7   : > { %4443 = vmatprep.subr.mxu1 %v4644_v1  ;;  %4427 = vmatpush3.msra.mxu0 %v3549_v55 }
 0x8b8   : > { %4444 = vmatpush3.msra.mxu1 %v3633_v56  ;;  %4428 = vmatprep.subr.mxu0 %v4644_v1 }
 0x8b9   : > { %4445 = vmatprep.subr.mxu1 %v4644_v1  ;;  %4429 = vmatpush3.msra.mxu0 %v3548_v57 }
 0x8ba   : > { %4446 = vmatpush3.msra.mxu1 %v3632_v7  ;;  %4430 = vmatprep.subr.mxu0 %v4644_v1 }
 0x8bb   : > { %4447 = vmatprep.subr.mxu1 %v4644_v1  ;;  %4431 = vmatpush3.msra.mxu0 %v3547_v58 }
 0x8bc   : > { %4448 = vmatpush3.msra.mxu1 %v3631_v59  ;;  %4432 = vmatprep.subr.mxu0 %v4644_v1 }
 0x8bd   : > { %4449 = vmatprep.subr.mxu1 %v4644_v1  ;;  %4433 = vmatpush3.msra.mxu0 %v3546_v60 }
 0x8be   : > { %4450 = vmatpush3.msra.mxu1 %v3630_v61  ;;  %4434 = vmatprep.subr.mxu0 %v4644_v1 }
 0x8bf   : > { %4451 = vmatprep.subr.mxu1 %v4644_v1  ;;  %4435 = vmatpush3.msra.mxu0 %v3545_v62 }
 0x8c0   : > { %4436 = vmatprep.mubr.msk.f32.mxu0 %vm4669_vm12, %v4644_v1  ;;  %4452 = vmatpush3.msra.mxu1 %v3629_v63 }
 0x8c1   : > { %4437 = vmatmul.mubr.msk.f32.vlgmr.msra.gmra.mxu0 %vm2390_vm13, %v3553_v2  ;;  %4453 = vmatprep.subr.mxu1 %v4644_v1 }
 0x8c2   : > { %4454 = vmatpush3.msra.mxu1 %v3628_v3  ;;  %4455 = vmatprep.mubr.msk.f32.mxu1 %vm4669_vm12, %v4644_v1 }
 0x8c3   : > { %4456 = vmatmul.mubr.msk.f32.vlgmr.msra.gmra.mxu1 %vm2390_vm13, %v3636_v4 }
 0x905   : > { %v2460_v6 = vpop.f32.mrf.mxu0 }
 0x906   : > { %v2464_v0 = vadd.f32 %v2460_v6, %v2381_v5 }
 0x907   : > { %v4172_v10 = vpop.f32.mrf.mxu0  ;;  %v2543_v11 = vpop.f32.mrf.mxu1 }
 0x908   : > { %v2547_v12 = vadd.f32 %v2543_v11, %v2464_v0 }
 0x909   : > { %v4191_v14 = vpop.f32.mrf.mxu1 }
 0x915   : > { %v2626_v15 = vpop.f32.mrf.mxu0 }
 0x916   : > { %v2630_v38 = vadd.f32 %v2626_v15, %v2547_v12 }
 0x917   : > { %v4210_v16 = vpop.f32.mrf.mxu0 }
 0x918   : > { %v2709_v13 = vpop.f32.mrf.mxu1 }
 0x919   : > { %v2713_v17 = vadd.f32 %v2709_v13, %v2630_v38 }
 0x91a   : > { %v4229_v18 = vpop.f32.mrf.mxu1 }
 0x927   : > { %v2792_v19 = vpop.f32.mrf.mxu0 }
 0x928   : > { %v2796_v1 = vadd.f32 %v2792_v19, %v2713_v17 }
 0x929   : > { %v4248_v20 = vpop.f32.mrf.mxu0 }
 0x92a   : > { %v2875_v21 = vpop.f32.mrf.mxu1 }
 0x92b   : > { %v2879_v22 = vadd.f32 %v2875_v21, %v2796_v1 }
 0x92c   : > { %v4267_v23 = vpop.f32.mrf.mxu1 }
 0x939   : > { %v2958_v24 = vpop.f32.mrf.mxu0 }
 0x93a   : > { %v2962_v34 = vadd.f32 %v2958_v24, %v2879_v22 }
 0x93b   : > { %v4286_v25 = vpop.f32.mrf.mxu0 }
 0x93c   : > { %v3041_v26 = vpop.f32.mrf.mxu1 }
 0x93d   : > { %v3045_v35 = vadd.f32 %v3041_v26, %v2962_v34 }
 0x93e   : > { %v4305_v27 = vpop.f32.mrf.mxu1 }
 0x94b   : > { %v3124_v28 = vpop.f32.mrf.mxu0 }
 0x94c   : > { %v3128_v37 = vadd.f32 %v3124_v28, %v3045_v35 }
 0x94d   : > { %v4324_v29 = vpop.f32.mrf.mxu0 }
 0x94e   : > { %v3207_v8 = vpop.f32.mrf.mxu1 }
 0x94f   : > { %v3211_v41 = vadd.f32 %v3207_v8, %v3128_v37 }
 0x950   : > { %v4343_v9 = vpop.f32.mrf.mxu1 }
 0x95d   : > { %v3290_v30 = vpop.f32.mrf.mxu0 }
 0x95e   : > { %v3294_v43 = vadd.f32 %v3290_v30, %v3211_v41 }
 0x95f   : > { %v4362_v31 = vpop.f32.mrf.mxu0 }
 0x960   : > { %v3373_v32 = vpop.f32.mrf.mxu1 }
 0x961   : > { %v3377_v44 = vadd.f32 %v3373_v32, %v3294_v43 }
 0x962   : > { %v4381_v33 = vpop.f32.mrf.mxu1 }
 0x96f   : > { %v3456_v36 = vpop.f32.mrf.mxu0 }
 0x970   : > { %v3460_v45 = vadd.f32 %v3456_v36, %v3377_v44 }
 0x971   : > { %v4400_v39 = vpop.f32.mrf.mxu0 }
 0x972   : > { %v3539_v40 = vpop.f32.mrf.mxu1 }
 0x973   : > { %v3543_v46 = vadd.f32 %v3539_v40, %v3460_v45 }
 0x974   : > { %v4419_v42 = vpop.f32.mrf.mxu1 }
 0x981   : > { %v3622_v47 = vpop.f32.mrf.mxu0 }
 0x982   : > { %v3626_v48 = vadd.f32 %v3622_v47, %v3543_v46 }
 0x983   : > { %v4438_v49 = vpop.f32.mrf.mxu0  ;;  %v3705_v50 = vpop.f32.mrf.mxu1 }
 0x984   : > { %v3709_v51 = vadd.f32 %v3705_v50, %v3626_v48 }
 0x985   : > { %v4457_v52 = vpop.f32.mrf.mxu1 }
 0x986   : > { %3710 = vst [vmem:[%s366_s20] sm:$0x1] %v3709_v51 }
 0x987   : > { %4588 = shalt.err (!%p4585_p0)
}
 0x988   : > { %s4589_s26 = scalar_lea.hbm %s5439_s28, 16  ;;  %s4593_s20 = scalar_lea.hbm %s5484_s10, 32 }
 0x989   : > { %p4590_p1 = scmp.ne.s32.totalorder %s5439_s28, %s4589_s26  ;;  %p4594_p4 = scmp.lt.s32.totalorder %s5439_s28, %s5484_s10 }
 0x98a   : > { %p4595_p7 = scmp.lt.s32.totalorder %s4593_s20, %s4589_s26 }
 0x98b   : > { %p4591_p2 = pnand %p4590_p1, %p4764_p5 }
 0x98c   : > { %p4596_p8 = por %p4595_p7, %p4594_p4 }
 0x98d   : > { %p4592_p3 = pneg %p4591_p2 }
 0x98f   : > { %p4597_p6 = pnand %p4596_p8, %p4592_p3 }
 0x991   : > { %4600 = shalt.err (!%p4597_p6)
}
 0x992   : > { %4462 = dma.vmem_to_hbm [thread:$0]  (%p4764_p5), %s3725_s0, 16, %s5439_s28, %s3712_s18  }
 0x993 PF: > { %p4474_p9 = scmp.ge.s32.totalorder %s4639_s16, 2  ;;  %s3736_s27 = sand.u32 1, %s4627_s13  }
 0x994   : > { %p5498_p10 = scmp.ne.s32.totalorder %s5492_s24, 0  ;;  %s3737_s17 = scalar_lea.sflag [#allocation4], %s3736_s27 }
 0x996   : > { %p4469_p11 = pnand %p4474_p9, %p5498_p10 }
 0x998   : > { %p4470_p12 = pneg %p4469_p11 }
 0x99a   : > { %4622 = dma.done.wait (%p4470_p12), %s3737_s17, 16  }
 0x99b   : > { %4624 = vsyncadd (%p4470_p12), %s3737_s17, 4294967280  ;;  %p21_p13 = scmp.ge.s32.totalorder %s4751_s19, 4   ;;  %s5499_s13 = smov %s4631_s14 }
 0x99c   : > { %s5500_s14 = smov %s4635_s15  ;;  %s5501_s15 = smov %s4762_s22 }
 0x99d   : > { %s5502_s16 = smov %s4751_s19  ;;  %23 = sbr.rel (!%p21_p13) target bundleno = 6 (0x6), region = 138 }
 0x9a2   :  { %3741 = vsyncpa [#allocation3], 1 }
 0x9a3   :  { %3743 = vsyncpa [#allocation3 + $0x1], 1 }
 0x9a4   :  { %3744 = vsyncpa [#allocation4], 1 }
 0x9a5   :  { %3746 = vsyncpa [#allocation4 + $0x1], 1 }

</bundles_post_ra>
